<compile_context>
chip_gen: v7x
topology: tpu7x:2x2x1
jax: 0.10.0
libtpu: 0.0.40
codegen_flags: <defaults>
</compile_context>

<pallas_src>
import jax
import jax.numpy as jnp
from jax import lax
from jax.experimental import pallas as pl
from jax.experimental.pallas import tpu as pltpu

# BertConfig(vocab_size=30522, hidden_size=256, ... defaults)
VOCAB = 30522
HIDDEN = 256
MAX_POS = 512
TYPE_VOCAB = 2
PAD_IDX = 0
LN_EPS = 1e-12  # BertConfig default layer_norm_eps


def _round_up(x, m):
    return (x + m - 1) // m * m


def seg_emb_forward(input_ids, word_tbl, pos_tbl, tt_tbl, gamma, beta,
                    token_type_ids=None, tq=256):
    """BertEmbeddings forward: word + position + token_type embeddings, LayerNorm.

    Absolute (arange) position ids and eval-mode dropout, matching the module's
    default forward path used by SegEmb.
    """
    B, S = input_ids.shape
    vocab, D = word_tbl.shape
    max_pos = pos_tbl.shape[0]
    assert tt_tbl.shape[0] == 2, "kernel assumes type_vocab_size == 2"
    if token_type_ids is None:
        token_type_ids = jnp.zeros((B, S), jnp.int32)

    # Tokens per grid step: sublane-dense (multiple of 8), capped at `tq`.
    TQ = min(tq, _round_up(S, 8))
    S_pad = _round_up(S, TQ)
    nq = S_pad // TQ
    assert S_pad <= max_pos, "sequence (padded) exceeds max_position_embeddings"

    pad = S_pad - S
    # Clamp ids so the data-dependent HBM gather can never go out of bounds; pad
    # tokens use the padding row (their outputs are sliced off at the end).
    ids = jnp.clip(input_ids.astype(jnp.int32), 0, vocab - 1)
    ids = jnp.pad(ids, ((0, 0), (0, pad)), constant_values=PAD_IDX)
    ids_flat = ids.reshape(B * S_pad)

    # type_vocab_size == 2: tt_emb = tt[0] + ind * (tt[1] - tt[0]), exact for 0/1 ids.
    tt_ind = jnp.clip(token_type_ids.astype(jnp.float32), 0.0, 1.0)
    tt_ind = jnp.pad(tt_ind, ((0, 0), (0, pad))).reshape(B, S_pad, 1)

    g2 = gamma.reshape(1, D)
    b2 = beta.reshape(1, D)
    word_dtype = word_tbl.dtype   # gather in native dtype; upcast in-kernel

    def kernel(ids_ref,                                        # scalar-prefetch ids (SMEM)
               w_hbm, pos_ref, tt_ref, ind_ref, gamma_ref, beta_ref,
               o_ref,                                          # (1, TQ, D) output tile
               wbuf, sem):                                     # (2*TQ, D) gather buffer + DMA sems
        b = pl.program_id(0)
        q = pl.program_id(1)

        cur = lax.rem(q, 2)            # slot holding this tile's rows (issued last step / primed)
        nxt = lax.rem(q + 1, 2)        # slot to prefetch the next tile into

        def issue_gather(qq, slot):
            base = (b * nq + qq) * TQ          # flat offset of tile (b, qq) in ids_flat
            dst0 = slot * TQ                   # row offset of this slot inside wbuf

            def issue(t, carry):
                row = ids_ref[base + t]
                pltpu.make_async_copy(
                    w_hbm.at[pl.ds(row, 1), :],
                    wbuf.at[pl.ds(dst0 + t, 1), :],
                    sem.at[slot]).start()
                return carry

            lax.fori_loop(0, TQ, issue, 0, unroll=8)

        # Prime this b-row's pipeline: the first q-step issues its own gather.
        @pl.when(q == 0)
        def _():
            issue_gather(0, cur)

        # Prefetch next q-tile's word rows (same b only; q axis is sequential).
        @pl.when(q + 1 < nq)
        def _():
            issue_gather(q + 1, nxt)

        # ---- non-gather arithmetic first: overlaps the in-flight row DMAs ----
        tt = tt_ref[...].astype(jnp.float32)         # (2, D) resident token-type table
        tt0 = tt[0:1, :]
        ttd = tt[1:2, :] - tt[0:1, :]
        rest = (pos_ref[...].astype(jnp.float32)     # contiguous position rows
                + tt0 + ind_ref[0] * ttd)            # (TQ, D)
        g = gamma_ref[...].astype(jnp.float32)
        bb = beta_ref[...].astype(jnp.float32)

        # ---- one aggregated wait for all TQ row copies into this slot ----
        cur_off = pl.multiple_of(cur * TQ, 8)
        pltpu.make_async_copy(w_hbm.at[pl.ds(0, TQ), :],
                              wbuf.at[pl.ds(cur_off, TQ), :],
                              sem.at[cur]).wait()

        x = wbuf[pl.ds(cur_off, TQ), :].astype(jnp.float32) + rest

        # ---- LayerNorm ----
        mean = jnp.mean(x, axis=-1, keepdims=True)
        xc = x - mean
        var = jnp.mean(xc * xc, axis=-1, keepdims=True)
        y = xc * lax.rsqrt(var + LN_EPS) * g + bb

        # Dropout: identity in eval mode.
        # TODO(synk): training-mode dropout (pltpu.prng_random_bits) not implemented.
        o_ref[...] = y[None].astype(o_ref.dtype)

    grid_spec = pltpu.PrefetchScalarGridSpec(
        num_scalar_prefetch=1,                 # flat token ids -> SMEM (gather addresses)
        grid=(B, nq),
        in_specs=[
            pl.BlockSpec(memory_space=pl.ANY),                          # word table, raw HBM
            pl.BlockSpec((TQ, D), lambda b, q, ids: (q, 0)),            # contiguous position rows
            pl.BlockSpec((TYPE_VOCAB, D), lambda b, q, ids: (0, 0)),    # resident tt table (2 KiB)
            pl.BlockSpec((1, TQ, 1), lambda b, q, ids: (b, q, 0)),      # token-type indicator
            pl.BlockSpec((1, D), lambda b, q, ids: (0, 0)),             # gamma
            pl.BlockSpec((1, D), lambda b, q, ids: (0, 0)),             # beta
        ],
        out_specs=pl.BlockSpec((1, TQ, D), lambda b, q, ids: (b, q, 0)),
        scratch_shapes=[pltpu.VMEM((2 * TQ, D), word_dtype),            # double-buffered gather
                        pltpu.SemaphoreType.DMA((2,))],
    )

    out = pl.pallas_call(
        kernel,
        grid_spec=grid_spec,
        out_shape=jax.ShapeDtypeStruct((B, S_pad, D), jnp.float32),
        # B axis parallel (megacore on v7x when B >= 2); q axis arbitrary because the
        # cross-step gather prefetch requires sequential iteration along q.
        compiler_params=pltpu.CompilerParams(
            dimension_semantics=("parallel", "arbitrary")),
    )(ids_flat, word_tbl, pos_tbl, tt_tbl, tt_ind, g2, b2)

    # TODO(synk): for very large B*S on v5e/v6e, a VMEM-resident (bf16) word table
    # (one bulk DMA + dynamic VMEM indexing, vmem_limit_bytes raised) beats the
    # per-row HBM gather; not implemented here.
    # TODO(synk): arbitrary user-supplied position_ids / past_key_values_length would
    # need a position gather; the module's default absolute-arange path is implemented.
    return out[:, :S, :]


def _reference(input_ids, token_type_ids, word_tbl, pos_tbl, tt_tbl, gamma, beta):
    B, S = input_ids.shape
    pos_ids = jnp.broadcast_to(jnp.arange(S, dtype=jnp.int32), (B, S))
    e = word_tbl[input_ids] + pos_tbl[pos_ids] + tt_tbl[token_type_ids]
    mean = e.mean(-1, keepdims=True)
    var = ((e - mean) ** 2).mean(-1, keepdims=True)
    return (e - mean) / jnp.sqrt(var + LN_EPS) * gamma + beta


if __name__ == "__main__":
    key = jax.random.PRNGKey(0)
    k_w, k_p, k_t, k_g, k_b, k_ids, k_tt = jax.random.split(key, 7)

    # Deterministic synthetic parameters (BERT-style N(0, 0.02) init).
    word_tbl = 0.02 * jax.random.normal(k_w, (VOCAB, HIDDEN), jnp.float32)
    word_tbl = word_tbl.at[PAD_IDX].set(0.0)  # padding_idx row zeroed, as nn.Embedding does
    pos_tbl = 0.02 * jax.random.normal(k_p, (MAX_POS, HIDDEN), jnp.float32)
    tt_tbl = 0.02 * jax.random.normal(k_t, (TYPE_VOCAB, HIDDEN), jnp.float32)
    gamma = jnp.ones((HIDDEN,), jnp.float32) + 0.01 * jax.random.normal(k_g, (HIDDEN,), jnp.float32)
    beta = 0.01 * jax.random.normal(k_b, (HIDDEN,), jnp.float32)

    # Small example: batch=2, seq=24 token ids; tq=8 forces a (2, 3) grid so the
    # cross-step double-buffered gather path (prime + prefetch + slot swap) is exercised.
    B, S = 2, 24
    input_ids = jax.random.randint(k_ids, (B, S), 1, VOCAB, dtype=jnp.int32)
    token_type_ids = jax.random.randint(k_tt, (B, S), 0, TYPE_VOCAB, dtype=jnp.int32)

    out = seg_emb_forward(input_ids, word_tbl, pos_tbl, tt_tbl, gamma, beta,
                          token_type_ids=token_type_ids, tq=8)
    out = jax.block_until_ready(out)

    ref = _reference(input_ids, token_type_ids, word_tbl, pos_tbl, tt_tbl, gamma, beta)
    assert out.shape == (B, S, HIDDEN)
    assert jnp.allclose(out, ref, atol=1e-5, rtol=1e-5), "mismatch vs JAX reference"

    print("KERNEL_OK")
</pallas_src>

<mosaic_0001>
module attributes {stable_mosaic.version = 11 : i64} {
  func.func @kernel(%arg0: i32, %arg1: i32, %arg2: memref<48xi32, #tpu.memory_space<smem>>, %arg3: memref<30522x256xf32, #tpu.memory_space<any>>, %arg4: memref<8x256xf32, #tpu.memory_space<vmem>>, %arg5: memref<2x256xf32, #tpu.memory_space<vmem>>, %arg6: memref<1x8x1xf32, #tpu.memory_space<vmem>>, %arg7: memref<1x256xf32, #tpu.memory_space<vmem>>, %arg8: memref<1x256xf32, #tpu.memory_space<vmem>>, %arg9: memref<1x8x256xf32, #tpu.memory_space<vmem>>, %arg10: memref<16x256xf32, #tpu.memory_space<vmem>>, %arg11: memref<2x!tpu.dma_semaphore, #tpu.memory_space<semaphore_mem>>) attributes {dimension_semantics = [#tpu.dimension_semantics<parallel>, #tpu.dimension_semantics<arbitrary>], iteration_bounds = array<i64: 2, 3>, scalar_prefetch = 1 : i64, scratch_operands = 2 : i64, tpu.core_type = #tpu.core_type<tc>, window_params = [{}, {transform_indices = @transform_1, window_bounds = array<i64: 8, 256>}, {pipeline_mode = #tpu.pipeline_mode<synchronous>, transform_indices = @transform_2, window_bounds = array<i64: 2, 256>}, {transform_indices = @transform_3, window_bounds = array<i64: 1, 8, 1>}, {pipeline_mode = #tpu.pipeline_mode<synchronous>, transform_indices = @transform_4, window_bounds = array<i64: 1, 256>}, {pipeline_mode = #tpu.pipeline_mode<synchronous>, transform_indices = @transform_5, window_bounds = array<i64: 1, 256>}, {transform_indices = @transform_6, window_bounds = array<i64: 1, 8, 256>}]} {
    %c2_i32 = arith.constant 2 : i32
    %0 = arith.remsi %arg1, %c2_i32 : i32
    %c1_i32 = arith.constant 1 : i32
    %1 = arith.addi %arg1, %c1_i32 : i32
    %c2_i32_0 = arith.constant 2 : i32
    %2 = arith.remsi %1, %c2_i32_0 : i32
    %c0_i32 = arith.constant 0 : i32
    %3 = arith.cmpi eq, %arg1, %c0_i32 : i32
    %4 = arith.extui %3 : i1 to i32
    %c0_i32_1 = arith.constant 0 : i32
    %5 = arith.cmpi ne, %4, %c0_i32_1 : i32
    scf.if %5 {
      %c3_i32_25 = arith.constant 3 : i32
      %57 = arith.muli %arg0, %c3_i32_25 : i32
      %c0_i32_26 = arith.constant 0 : i32
      %58 = arith.addi %57, %c0_i32_26 : i32
      %c8_i32_27 = arith.constant 8 : i32
      %59 = arith.muli %58, %c8_i32_27 : i32
      %c8_i32_28 = arith.constant 8 : i32
      %60 = arith.muli %0, %c8_i32_28 : i32
      %c0_i32_29 = arith.constant 0 : i32
      %61 = arith.addi %59, %c0_i32_29 : i32
      %62 = arith.index_cast %61 : i32 to index
      %63 = memref.load %arg2[%62] : memref<48xi32, #tpu.memory_space<smem>>
      %64 = arith.addi %60, %c0_i32_29 : i32
      %c0_i32_30 = arith.constant 0 : i32
      %65 = tpu.memref_slice %arg3[%63, %c0_i32_30] : memref<30522x256xf32, #tpu.memory_space<any>> -> memref<1x256xf32, #tpu.memory_space<any>>
      %c0_i32_31 = arith.constant 0 : i32
      %66 = tpu.memref_slice %arg10[%64, %c0_i32_31] : memref<16x256xf32, #tpu.memory_space<vmem>> -> memref<1x256xf32, #tpu.memory_space<vmem>>
      %67 = tpu.memref_slice %arg11[%0] : memref<2x!tpu.dma_semaphore, #tpu.memory_space<semaphore_mem>> -> memref<1x!tpu.dma_semaphore, #tpu.memory_space<semaphore_mem>>
      %68 = tpu.memref_squeeze %67 : memref<1x!tpu.dma_semaphore, #tpu.memory_space<semaphore_mem>> -> memref<!tpu.dma_semaphore, #tpu.memory_space<semaphore_mem>>
      tpu.enqueue_dma source(%65 : memref<1x256xf32, #tpu.memory_space<any>>) target(%66 : memref<1x256xf32, #tpu.memory_space<vmem>>) target_semaphore(%68 : memref<!tpu.dma_semaphore, #tpu.memory_space<semaphore_mem>>)
      %c1_i32_32 = arith.constant 1 : i32
      %69 = arith.addi %59, %c1_i32_32 : i32
      %70 = arith.index_cast %69 : i32 to index
      %71 = memref.load %arg2[%70] : memref<48xi32, #tpu.memory_space<smem>>
      %72 = arith.addi %60, %c1_i32_32 : i32
      %c0_i32_33 = arith.constant 0 : i32
      %73 = tpu.memref_slice %arg3[%71, %c0_i32_33] : memref<30522x256xf32, #tpu.memory_space<any>> -> memref<1x256xf32, #tpu.memory_space<any>>
      %c0_i32_34 = arith.constant 0 : i32
      %74 = tpu.memref_slice %arg10[%72, %c0_i32_34] : memref<16x256xf32, #tpu.memory_space<vmem>> -> memref<1x256xf32, #tpu.memory_space<vmem>>
      %75 = tpu.memref_slice %arg11[%0] : memref<2x!tpu.dma_semaphore, #tpu.memory_space<semaphore_mem>> -> memref<1x!tpu.dma_semaphore, #tpu.memory_space<semaphore_mem>>
      %76 = tpu.memref_squeeze %75 : memref<1x!tpu.dma_semaphore, #tpu.memory_space<semaphore_mem>> -> memref<!tpu.dma_semaphore, #tpu.memory_space<semaphore_mem>>
      tpu.enqueue_dma source(%73 : memref<1x256xf32, #tpu.memory_space<any>>) target(%74 : memref<1x256xf32, #tpu.memory_space<vmem>>) target_semaphore(%76 : memref<!tpu.dma_semaphore, #tpu.memory_space<semaphore_mem>>)
      %c2_i32_35 = arith.constant 2 : i32
      %77 = arith.addi %59, %c2_i32_35 : i32
      %78 = arith.index_cast %77 : i32 to index
      %79 = memref.load %arg2[%78] : memref<48xi32, #tpu.memory_space<smem>>
      %80 = arith.addi %60, %c2_i32_35 : i32
      %c0_i32_36 = arith.constant 0 : i32
      %81 = tpu.memref_slice %arg3[%79, %c0_i32_36] : memref<30522x256xf32, #tpu.memory_space<any>> -> memref<1x256xf32, #tpu.memory_space<any>>
      %c0_i32_37 = arith.constant 0 : i32
      %82 = tpu.memref_slice %arg10[%80, %c0_i32_37] : memref<16x256xf32, #tpu.memory_space<vmem>> -> memref<1x256xf32, #tpu.memory_space<vmem>>
      %83 = tpu.memref_slice %arg11[%0] : memref<2x!tpu.dma_semaphore, #tpu.memory_space<semaphore_mem>> -> memref<1x!tpu.dma_semaphore, #tpu.memory_space<semaphore_mem>>
      %84 = tpu.memref_squeeze %83 : memref<1x!tpu.dma_semaphore, #tpu.memory_space<semaphore_mem>> -> memref<!tpu.dma_semaphore, #tpu.memory_space<semaphore_mem>>
      tpu.enqueue_dma source(%81 : memref<1x256xf32, #tpu.memory_space<any>>) target(%82 : memref<1x256xf32, #tpu.memory_space<vmem>>) target_semaphore(%84 : memref<!tpu.dma_semaphore, #tpu.memory_space<semaphore_mem>>)
      %c3_i32_38 = arith.constant 3 : i32
      %85 = arith.addi %59, %c3_i32_38 : i32
      %86 = arith.index_cast %85 : i32 to index
      %87 = memref.load %arg2[%86] : memref<48xi32, #tpu.memory_space<smem>>
      %88 = arith.addi %60, %c3_i32_38 : i32
      %c0_i32_39 = arith.constant 0 : i32
      %89 = tpu.memref_slice %arg3[%87, %c0_i32_39] : memref<30522x256xf32, #tpu.memory_space<any>> -> memref<1x256xf32, #tpu.memory_space<any>>
      %c0_i32_40 = arith.constant 0 : i32
      %90 = tpu.memref_slice %arg10[%88, %c0_i32_40] : memref<16x256xf32, #tpu.memory_space<vmem>> -> memref<1x256xf32, #tpu.memory_space<vmem>>
      %91 = tpu.memref_slice %arg11[%0] : memref<2x!tpu.dma_semaphore, #tpu.memory_space<semaphore_mem>> -> memref<1x!tpu.dma_semaphore, #tpu.memory_space<semaphore_mem>>
      %92 = tpu.memref_squeeze %91 : memref<1x!tpu.dma_semaphore, #tpu.memory_space<semaphore_mem>> -> memref<!tpu.dma_semaphore, #tpu.memory_space<semaphore_mem>>
      tpu.enqueue_dma source(%89 : memref<1x256xf32, #tpu.memory_space<any>>) target(%90 : memref<1x256xf32, #tpu.memory_space<vmem>>) target_semaphore(%92 : memref<!tpu.dma_semaphore, #tpu.memory_space<semaphore_mem>>)
      %c4_i32 = arith.constant 4 : i32
      %93 = arith.addi %59, %c4_i32 : i32
      %94 = arith.index_cast %93 : i32 to index
      %95 = memref.load %arg2[%94] : memref<48xi32, #tpu.memory_space<smem>>
      %96 = arith.addi %60, %c4_i32 : i32
      %c0_i32_41 = arith.constant 0 : i32
      %97 = tpu.memref_slice %arg3[%95, %c0_i32_41] : memref<30522x256xf32, #tpu.memory_space<any>> -> memref<1x256xf32, #tpu.memory_space<any>>
      %c0_i32_42 = arith.constant 0 : i32
      %98 = tpu.memref_slice %arg10[%96, %c0_i32_42] : memref<16x256xf32, #tpu.memory_space<vmem>> -> memref<1x256xf32, #tpu.memory_space<vmem>>
      %99 = tpu.memref_slice %arg11[%0] : memref<2x!tpu.dma_semaphore, #tpu.memory_space<semaphore_mem>> -> memref<1x!tpu.dma_semaphore, #tpu.memory_space<semaphore_mem>>
      %100 = tpu.memref_squeeze %99 : memref<1x!tpu.dma_semaphore, #tpu.memory_space<semaphore_mem>> -> memref<!tpu.dma_semaphore, #tpu.memory_space<semaphore_mem>>
      tpu.enqueue_dma source(%97 : memref<1x256xf32, #tpu.memory_space<any>>) target(%98 : memref<1x256xf32, #tpu.memory_space<vmem>>) target_semaphore(%100 : memref<!tpu.dma_semaphore, #tpu.memory_space<semaphore_mem>>)
      %c5_i32 = arith.constant 5 : i32
      %101 = arith.addi %59, %c5_i32 : i32
      %102 = arith.index_cast %101 : i32 to index
      %103 = memref.load %arg2[%102] : memref<48xi32, #tpu.memory_space<smem>>
      %104 = arith.addi %60, %c5_i32 : i32
      %c0_i32_43 = arith.constant 0 : i32
      %105 = tpu.memref_slice %arg3[%103, %c0_i32_43] : memref<30522x256xf32, #tpu.memory_space<any>> -> memref<1x256xf32, #tpu.memory_space<any>>
      %c0_i32_44 = arith.constant 0 : i32
      %106 = tpu.memref_slice %arg10[%104, %c0_i32_44] : memref<16x256xf32, #tpu.memory_space<vmem>> -> memref<1x256xf32, #tpu.memory_space<vmem>>
      %107 = tpu.memref_slice %arg11[%0] : memref<2x!tpu.dma_semaphore, #tpu.memory_space<semaphore_mem>> -> memref<1x!tpu.dma_semaphore, #tpu.memory_space<semaphore_mem>>
      %108 = tpu.memref_squeeze %107 : memref<1x!tpu.dma_semaphore, #tpu.memory_space<semaphore_mem>> -> memref<!tpu.dma_semaphore, #tpu.memory_space<semaphore_mem>>
      tpu.enqueue_dma source(%105 : memref<1x256xf32, #tpu.memory_space<any>>) target(%106 : memref<1x256xf32, #tpu.memory_space<vmem>>) target_semaphore(%108 : memref<!tpu.dma_semaphore, #tpu.memory_space<semaphore_mem>>)
      %c6_i32 = arith.constant 6 : i32
      %109 = arith.addi %59, %c6_i32 : i32
      %110 = arith.index_cast %109 : i32 to index
      %111 = memref.load %arg2[%110] : memref<48xi32, #tpu.memory_space<smem>>
      %112 = arith.addi %60, %c6_i32 : i32
      %c0_i32_45 = arith.constant 0 : i32
      %113 = tpu.memref_slice %arg3[%111, %c0_i32_45] : memref<30522x256xf32, #tpu.memory_space<any>> -> memref<1x256xf32, #tpu.memory_space<any>>
      %c0_i32_46 = arith.constant 0 : i32
      %114 = tpu.memref_slice %arg10[%112, %c0_i32_46] : memref<16x256xf32, #tpu.memory_space<vmem>> -> memref<1x256xf32, #tpu.memory_space<vmem>>
      %115 = tpu.memref_slice %arg11[%0] : memref<2x!tpu.dma_semaphore, #tpu.memory_space<semaphore_mem>> -> memref<1x!tpu.dma_semaphore, #tpu.memory_space<semaphore_mem>>
      %116 = tpu.memref_squeeze %115 : memref<1x!tpu.dma_semaphore, #tpu.memory_space<semaphore_mem>> -> memref<!tpu.dma_semaphore, #tpu.memory_space<semaphore_mem>>
      tpu.enqueue_dma source(%113 : memref<1x256xf32, #tpu.memory_space<any>>) target(%114 : memref<1x256xf32, #tpu.memory_space<vmem>>) target_semaphore(%116 : memref<!tpu.dma_semaphore, #tpu.memory_space<semaphore_mem>>)
      %c7_i32 = arith.constant 7 : i32
      %117 = arith.addi %59, %c7_i32 : i32
      %118 = arith.index_cast %117 : i32 to index
      %119 = memref.load %arg2[%118] : memref<48xi32, #tpu.memory_space<smem>>
      %120 = arith.addi %60, %c7_i32 : i32
      %c0_i32_47 = arith.constant 0 : i32
      %121 = tpu.memref_slice %arg3[%119, %c0_i32_47] : memref<30522x256xf32, #tpu.memory_space<any>> -> memref<1x256xf32, #tpu.memory_space<any>>
      %c0_i32_48 = arith.constant 0 : i32
      %122 = tpu.memref_slice %arg10[%120, %c0_i32_48] : memref<16x256xf32, #tpu.memory_space<vmem>> -> memref<1x256xf32, #tpu.memory_space<vmem>>
      %123 = tpu.memref_slice %arg11[%0] : memref<2x!tpu.dma_semaphore, #tpu.memory_space<semaphore_mem>> -> memref<1x!tpu.dma_semaphore, #tpu.memory_space<semaphore_mem>>
      %124 = tpu.memref_squeeze %123 : memref<1x!tpu.dma_semaphore, #tpu.memory_space<semaphore_mem>> -> memref<!tpu.dma_semaphore, #tpu.memory_space<semaphore_mem>>
      tpu.enqueue_dma source(%121 : memref<1x256xf32, #tpu.memory_space<any>>) target(%122 : memref<1x256xf32, #tpu.memory_space<vmem>>) target_semaphore(%124 : memref<!tpu.dma_semaphore, #tpu.memory_space<semaphore_mem>>)
      %c8_i32_49 = arith.constant 8 : i32
    } else {
    }
    %c1_i32_2 = arith.constant 1 : i32
    %6 = arith.addi %arg1, %c1_i32_2 : i32
    %c3_i32 = arith.constant 3 : i32
    %7 = arith.cmpi slt, %6, %c3_i32 : i32
    %8 = arith.extui %7 : i1 to i32
    %c0_i32_3 = arith.constant 0 : i32
    %9 = arith.cmpi ne, %8, %c0_i32_3 : i32
    scf.if %9 {
      %c1_i32_25 = arith.constant 1 : i32
      %57 = arith.addi %arg1, %c1_i32_25 : i32
      %c3_i32_26 = arith.constant 3 : i32
      %58 = arith.muli %arg0, %c3_i32_26 : i32
      %59 = arith.addi %58, %57 : i32
      %c8_i32_27 = arith.constant 8 : i32
      %60 = arith.muli %59, %c8_i32_27 : i32
      %c8_i32_28 = arith.constant 8 : i32
      %61 = arith.muli %2, %c8_i32_28 : i32
      %c0_i32_29 = arith.constant 0 : i32
      %62 = arith.addi %60, %c0_i32_29 : i32
      %63 = arith.index_cast %62 : i32 to index
      %64 = memref.load %arg2[%63] : memref<48xi32, #tpu.memory_space<smem>>
      %65 = arith.addi %61, %c0_i32_29 : i32
      %c0_i32_30 = arith.constant 0 : i32
      %66 = tpu.memref_slice %arg3[%64, %c0_i32_30] : memref<30522x256xf32, #tpu.memory_space<any>> -> memref<1x256xf32, #tpu.memory_space<any>>
      %c0_i32_31 = arith.constant 0 : i32
      %67 = tpu.memref_slice %arg10[%65, %c0_i32_31] : memref<16x256xf32, #tpu.memory_space<vmem>> -> memref<1x256xf32, #tpu.memory_space<vmem>>
      %68 = tpu.memref_slice %arg11[%2] : memref<2x!tpu.dma_semaphore, #tpu.memory_space<semaphore_mem>> -> memref<1x!tpu.dma_semaphore, #tpu.memory_space<semaphore_mem>>
      %69 = tpu.memref_squeeze %68 : memref<1x!tpu.dma_semaphore, #tpu.memory_space<semaphore_mem>> -> memref<!tpu.dma_semaphore, #tpu.memory_space<semaphore_mem>>
      tpu.enqueue_dma source(%66 : memref<1x256xf32, #tpu.memory_space<any>>) target(%67 : memref<1x256xf32, #tpu.memory_space<vmem>>) target_semaphore(%69 : memref<!tpu.dma_semaphore, #tpu.memory_space<semaphore_mem>>)
      %c1_i32_32 = arith.constant 1 : i32
      %70 = arith.addi %60, %c1_i32_32 : i32
      %71 = arith.index_cast %70 : i32 to index
      %72 = memref.load %arg2[%71] : memref<48xi32, #tpu.memory_space<smem>>
      %73 = arith.addi %61, %c1_i32_32 : i32
      %c0_i32_33 = arith.constant 0 : i32
      %74 = tpu.memref_slice %arg3[%72, %c0_i32_33] : memref<30522x256xf32, #tpu.memory_space<any>> -> memref<1x256xf32, #tpu.memory_space<any>>
      %c0_i32_34 = arith.constant 0 : i32
      %75 = tpu.memref_slice %arg10[%73, %c0_i32_34] : memref<16x256xf32, #tpu.memory_space<vmem>> -> memref<1x256xf32, #tpu.memory_space<vmem>>
      %76 = tpu.memref_slice %arg11[%2] : memref<2x!tpu.dma_semaphore, #tpu.memory_space<semaphore_mem>> -> memref<1x!tpu.dma_semaphore, #tpu.memory_space<semaphore_mem>>
      %77 = tpu.memref_squeeze %76 : memref<1x!tpu.dma_semaphore, #tpu.memory_space<semaphore_mem>> -> memref<!tpu.dma_semaphore, #tpu.memory_space<semaphore_mem>>
      tpu.enqueue_dma source(%74 : memref<1x256xf32, #tpu.memory_space<any>>) target(%75 : memref<1x256xf32, #tpu.memory_space<vmem>>) target_semaphore(%77 : memref<!tpu.dma_semaphore, #tpu.memory_space<semaphore_mem>>)
      %c2_i32_35 = arith.constant 2 : i32
      %78 = arith.addi %60, %c2_i32_35 : i32
      %79 = arith.index_cast %78 : i32 to index
      %80 = memref.load %arg2[%79] : memref<48xi32, #tpu.memory_space<smem>>
      %81 = arith.addi %61, %c2_i32_35 : i32
      %c0_i32_36 = arith.constant 0 : i32
      %82 = tpu.memref_slice %arg3[%80, %c0_i32_36] : memref<30522x256xf32, #tpu.memory_space<any>> -> memref<1x256xf32, #tpu.memory_space<any>>
      %c0_i32_37 = arith.constant 0 : i32
      %83 = tpu.memref_slice %arg10[%81, %c0_i32_37] : memref<16x256xf32, #tpu.memory_space<vmem>> -> memref<1x256xf32, #tpu.memory_space<vmem>>
      %84 = tpu.memref_slice %arg11[%2] : memref<2x!tpu.dma_semaphore, #tpu.memory_space<semaphore_mem>> -> memref<1x!tpu.dma_semaphore, #tpu.memory_space<semaphore_mem>>
      %85 = tpu.memref_squeeze %84 : memref<1x!tpu.dma_semaphore, #tpu.memory_space<semaphore_mem>> -> memref<!tpu.dma_semaphore, #tpu.memory_space<semaphore_mem>>
      tpu.enqueue_dma source(%82 : memref<1x256xf32, #tpu.memory_space<any>>) target(%83 : memref<1x256xf32, #tpu.memory_space<vmem>>) target_semaphore(%85 : memref<!tpu.dma_semaphore, #tpu.memory_space<semaphore_mem>>)
      %c3_i32_38 = arith.constant 3 : i32
      %86 = arith.addi %60, %c3_i32_38 : i32
      %87 = arith.index_cast %86 : i32 to index
      %88 = memref.load %arg2[%87] : memref<48xi32, #tpu.memory_space<smem>>
      %89 = arith.addi %61, %c3_i32_38 : i32
      %c0_i32_39 = arith.constant 0 : i32
      %90 = tpu.memref_slice %arg3[%88, %c0_i32_39] : memref<30522x256xf32, #tpu.memory_space<any>> -> memref<1x256xf32, #tpu.memory_space<any>>
      %c0_i32_40 = arith.constant 0 : i32
      %91 = tpu.memref_slice %arg10[%89, %c0_i32_40] : memref<16x256xf32, #tpu.memory_space<vmem>> -> memref<1x256xf32, #tpu.memory_space<vmem>>
      %92 = tpu.memref_slice %arg11[%2] : memref<2x!tpu.dma_semaphore, #tpu.memory_space<semaphore_mem>> -> memref<1x!tpu.dma_semaphore, #tpu.memory_space<semaphore_mem>>
      %93 = tpu.memref_squeeze %92 : memref<1x!tpu.dma_semaphore, #tpu.memory_space<semaphore_mem>> -> memref<!tpu.dma_semaphore, #tpu.memory_space<semaphore_mem>>
      tpu.enqueue_dma source(%90 : memref<1x256xf32, #tpu.memory_space<any>>) target(%91 : memref<1x256xf32, #tpu.memory_space<vmem>>) target_semaphore(%93 : memref<!tpu.dma_semaphore, #tpu.memory_space<semaphore_mem>>)
      %c4_i32 = arith.constant 4 : i32
      %94 = arith.addi %60, %c4_i32 : i32
      %95 = arith.index_cast %94 : i32 to index
      %96 = memref.load %arg2[%95] : memref<48xi32, #tpu.memory_space<smem>>
      %97 = arith.addi %61, %c4_i32 : i32
      %c0_i32_41 = arith.constant 0 : i32
      %98 = tpu.memref_slice %arg3[%96, %c0_i32_41] : memref<30522x256xf32, #tpu.memory_space<any>> -> memref<1x256xf32, #tpu.memory_space<any>>
      %c0_i32_42 = arith.constant 0 : i32
      %99 = tpu.memref_slice %arg10[%97, %c0_i32_42] : memref<16x256xf32, #tpu.memory_space<vmem>> -> memref<1x256xf32, #tpu.memory_space<vmem>>
      %100 = tpu.memref_slice %arg11[%2] : memref<2x!tpu.dma_semaphore, #tpu.memory_space<semaphore_mem>> -> memref<1x!tpu.dma_semaphore, #tpu.memory_space<semaphore_mem>>
      %101 = tpu.memref_squeeze %100 : memref<1x!tpu.dma_semaphore, #tpu.memory_space<semaphore_mem>> -> memref<!tpu.dma_semaphore, #tpu.memory_space<semaphore_mem>>
      tpu.enqueue_dma source(%98 : memref<1x256xf32, #tpu.memory_space<any>>) target(%99 : memref<1x256xf32, #tpu.memory_space<vmem>>) target_semaphore(%101 : memref<!tpu.dma_semaphore, #tpu.memory_space<semaphore_mem>>)
      %c5_i32 = arith.constant 5 : i32
      %102 = arith.addi %60, %c5_i32 : i32
      %103 = arith.index_cast %102 : i32 to index
      %104 = memref.load %arg2[%103] : memref<48xi32, #tpu.memory_space<smem>>
      %105 = arith.addi %61, %c5_i32 : i32
      %c0_i32_43 = arith.constant 0 : i32
      %106 = tpu.memref_slice %arg3[%104, %c0_i32_43] : memref<30522x256xf32, #tpu.memory_space<any>> -> memref<1x256xf32, #tpu.memory_space<any>>
      %c0_i32_44 = arith.constant 0 : i32
      %107 = tpu.memref_slice %arg10[%105, %c0_i32_44] : memref<16x256xf32, #tpu.memory_space<vmem>> -> memref<1x256xf32, #tpu.memory_space<vmem>>
      %108 = tpu.memref_slice %arg11[%2] : memref<2x!tpu.dma_semaphore, #tpu.memory_space<semaphore_mem>> -> memref<1x!tpu.dma_semaphore, #tpu.memory_space<semaphore_mem>>
      %109 = tpu.memref_squeeze %108 : memref<1x!tpu.dma_semaphore, #tpu.memory_space<semaphore_mem>> -> memref<!tpu.dma_semaphore, #tpu.memory_space<semaphore_mem>>
      tpu.enqueue_dma source(%106 : memref<1x256xf32, #tpu.memory_space<any>>) target(%107 : memref<1x256xf32, #tpu.memory_space<vmem>>) target_semaphore(%109 : memref<!tpu.dma_semaphore, #tpu.memory_space<semaphore_mem>>)
      %c6_i32 = arith.constant 6 : i32
      %110 = arith.addi %60, %c6_i32 : i32
      %111 = arith.index_cast %110 : i32 to index
      %112 = memref.load %arg2[%111] : memref<48xi32, #tpu.memory_space<smem>>
      %113 = arith.addi %61, %c6_i32 : i32
      %c0_i32_45 = arith.constant 0 : i32
      %114 = tpu.memref_slice %arg3[%112, %c0_i32_45] : memref<30522x256xf32, #tpu.memory_space<any>> -> memref<1x256xf32, #tpu.memory_space<any>>
      %c0_i32_46 = arith.constant 0 : i32
      %115 = tpu.memref_slice %arg10[%113, %c0_i32_46] : memref<16x256xf32, #tpu.memory_space<vmem>> -> memref<1x256xf32, #tpu.memory_space<vmem>>
      %116 = tpu.memref_slice %arg11[%2] : memref<2x!tpu.dma_semaphore, #tpu.memory_space<semaphore_mem>> -> memref<1x!tpu.dma_semaphore, #tpu.memory_space<semaphore_mem>>
      %117 = tpu.memref_squeeze %116 : memref<1x!tpu.dma_semaphore, #tpu.memory_space<semaphore_mem>> -> memref<!tpu.dma_semaphore, #tpu.memory_space<semaphore_mem>>
      tpu.enqueue_dma source(%114 : memref<1x256xf32, #tpu.memory_space<any>>) target(%115 : memref<1x256xf32, #tpu.memory_space<vmem>>) target_semaphore(%117 : memref<!tpu.dma_semaphore, #tpu.memory_space<semaphore_mem>>)
      %c7_i32 = arith.constant 7 : i32
      %118 = arith.addi %60, %c7_i32 : i32
      %119 = arith.index_cast %118 : i32 to index
      %120 = memref.load %arg2[%119] : memref<48xi32, #tpu.memory_space<smem>>
      %121 = arith.addi %61, %c7_i32 : i32
      %c0_i32_47 = arith.constant 0 : i32
      %122 = tpu.memref_slice %arg3[%120, %c0_i32_47] : memref<30522x256xf32, #tpu.memory_space<any>> -> memref<1x256xf32, #tpu.memory_space<any>>
      %c0_i32_48 = arith.constant 0 : i32
      %123 = tpu.memref_slice %arg10[%121, %c0_i32_48] : memref<16x256xf32, #tpu.memory_space<vmem>> -> memref<1x256xf32, #tpu.memory_space<vmem>>
      %124 = tpu.memref_slice %arg11[%2] : memref<2x!tpu.dma_semaphore, #tpu.memory_space<semaphore_mem>> -> memref<1x!tpu.dma_semaphore, #tpu.memory_space<semaphore_mem>>
      %125 = tpu.memref_squeeze %124 : memref<1x!tpu.dma_semaphore, #tpu.memory_space<semaphore_mem>> -> memref<!tpu.dma_semaphore, #tpu.memory_space<semaphore_mem>>
      tpu.enqueue_dma source(%122 : memref<1x256xf32, #tpu.memory_space<any>>) target(%123 : memref<1x256xf32, #tpu.memory_space<vmem>>) target_semaphore(%125 : memref<!tpu.dma_semaphore, #tpu.memory_space<semaphore_mem>>)
      %c8_i32_49 = arith.constant 8 : i32
    } else {
    }
    %c0 = arith.constant 0 : index
    %c0_4 = arith.constant 0 : index
    %10 = vector.load %arg5[%c0, %c0_4] : memref<2x256xf32, #tpu.memory_space<vmem>>, vector<2x256xf32>
    %11 = vector.extract_strided_slice %10 {offsets = [0, 0], sizes = [1, 256], strides = [1, 1]} : vector<2x256xf32> to vector<1x256xf32>
    %12 = vector.extract_strided_slice %10 {offsets = [1, 0], sizes = [1, 256], strides = [1, 1]} : vector<2x256xf32> to vector<1x256xf32>
    %13 = vector.extract_strided_slice %10 {offsets = [0, 0], sizes = [1, 256], strides = [1, 1]} : vector<2x256xf32> to vector<1x256xf32>
    %14 = arith.subf %12, %13 : vector<1x256xf32>
    %c0_5 = arith.constant 0 : index
    %c0_6 = arith.constant 0 : index
    %15 = vector.load %arg4[%c0_5, %c0_6] : memref<8x256xf32, #tpu.memory_space<vmem>>, vector<8x256xf32>
    %16 = vector.broadcast %11 : vector<1x256xf32> to vector<8x256xf32>
    %17 = arith.addf %15, %16 : vector<8x256xf32>
    %c0_7 = arith.constant 0 : index
    %c0_8 = arith.constant 0 : index
    %c0_9 = arith.constant 0 : index
    %18 = vector.load %arg6[%c0_7, %c0_8, %c0_9] : memref<1x8x1xf32, #tpu.memory_space<vmem>>, vector<1x8x1xf32>
    %19 = vector.shape_cast %18 : vector<1x8x1xf32> to vector<8x1xf32>
    %20 = vector.broadcast %19 : vector<8x1xf32> to vector<8x256xf32>
    %21 = vector.broadcast %14 : vector<1x256xf32> to vector<8x256xf32>
    %22 = arith.mulf %20, %21 : vector<8x256xf32>
    %23 = arith.addf %17, %22 : vector<8x256xf32>
    %c0_10 = arith.constant 0 : index
    %c0_11 = arith.constant 0 : index
    %24 = vector.load %arg7[%c0_10, %c0_11] : memref<1x256xf32, #tpu.memory_space<vmem>>, vector<1x256xf32>
    %c0_12 = arith.constant 0 : index
    %c0_13 = arith.constant 0 : index
    %25 = vector.load %arg8[%c0_12, %c0_13] : memref<1x256xf32, #tpu.memory_space<vmem>>, vector<1x256xf32>
    %c8_i32 = arith.constant 8 : i32
    %26 = arith.muli %0, %c8_i32 : i32
    %27 = tpu.assume_multiple %26, 8 : i32
    %c0_i32_14 = arith.constant 0 : i32
    %c0_i32_15 = arith.constant 0 : i32
    %28 = tpu.memref_slice %arg3[%c0_i32_14, %c0_i32_15] : memref<30522x256xf32, #tpu.memory_space<any>> -> memref<8x256xf32, #tpu.memory_space<any>>
    %c0_i32_16 = arith.constant 0 : i32
    %29 = tpu.memref_slice %arg10[%27, %c0_i32_16] : memref<16x256xf32, #tpu.memory_space<vmem>> -> memref<8x256xf32, #tpu.memory_space<vmem>>
    %30 = tpu.memref_slice %arg11[%0] : memref<2x!tpu.dma_semaphore, #tpu.memory_space<semaphore_mem>> -> memref<1x!tpu.dma_semaphore, #tpu.memory_space<semaphore_mem>>
    %31 = tpu.memref_squeeze %30 : memref<1x!tpu.dma_semaphore, #tpu.memory_space<semaphore_mem>> -> memref<!tpu.dma_semaphore, #tpu.memory_space<semaphore_mem>>
    tpu.wait_dma2 semaphore(%31 : memref<!tpu.dma_semaphore, #tpu.memory_space<semaphore_mem>>) src(%28 : memref<8x256xf32, #tpu.memory_space<any>>) dst(%29 : memref<8x256xf32, #tpu.memory_space<vmem>>)
    %32 = arith.index_cast %27 : i32 to index
    %c0_17 = arith.constant 0 : index
    %33 = vector.load %arg10[%32, %c0_17] : memref<16x256xf32, #tpu.memory_space<vmem>>, vector<8x256xf32>
    %34 = arith.addf %33, %23 : vector<8x256xf32>
    %cst = arith.constant dense<0.000000e+00> : vector<8xf32>
    %35 = vector.multi_reduction <add>, %34, %cst [1] : vector<8x256xf32> to vector<8xf32>
    %36 = vector.shape_cast %35 : vector<8xf32> to vector<8x1xf32>
    %cst_18 = arith.constant 2.560000e+02 : f32
    %37 = vector.broadcast %cst_18 : f32 to vector<8x1xf32>
    %38 = arith.divf %36, %37 : vector<8x1xf32>
    %39 = vector.broadcast %38 : vector<8x1xf32> to vector<8x256xf32>
    %40 = arith.subf %34, %39 : vector<8x256xf32>
    %41 = arith.mulf %40, %40 : vector<8x256xf32>
    %cst_19 = arith.constant dense<0.000000e+00> : vector<8xf32>
    %42 = vector.multi_reduction <add>, %41, %cst_19 [1] : vector<8x256xf32> to vector<8xf32>
    %43 = vector.shape_cast %42 : vector<8xf32> to vector<8x1xf32>
    %cst_20 = arith.constant 2.560000e+02 : f32
    %44 = vector.broadcast %cst_20 : f32 to vector<8x1xf32>
    %45 = arith.divf %43, %44 : vector<8x1xf32>
    %cst_21 = arith.constant 9.99999996E-13 : f32
    %46 = vector.broadcast %cst_21 : f32 to vector<8x1xf32>
    %47 = arith.addf %45, %46 : vector<8x1xf32>
    %48 = math.rsqrt %47 : vector<8x1xf32>
    %49 = vector.broadcast %48 : vector<8x1xf32> to vector<8x256xf32>
    %50 = arith.mulf %40, %49 : vector<8x256xf32>
    %51 = vector.broadcast %24 : vector<1x256xf32> to vector<8x256xf32>
    %52 = arith.mulf %50, %51 : vector<8x256xf32>
    %53 = vector.broadcast %25 : vector<1x256xf32> to vector<8x256xf32>
    %54 = arith.addf %52, %53 : vector<8x256xf32>
    %55 = vector.shape_cast %54 : vector<8x256xf32> to vector<1x8x256xf32>
    %c0_22 = arith.constant 0 : index
    %c0_23 = arith.constant 0 : index
    %c0_24 = arith.constant 0 : index
    %56 = vector.load %arg9[%c0_22, %c0_23, %c0_24] : memref<1x8x256xf32, #tpu.memory_space<vmem>>, vector<1x8x256xf32>
    tpu.vector_store %arg9[%c0_22, %c0_23, %c0_24], %55 {strides = array<i32>} : memref<1x8x256xf32, #tpu.memory_space<vmem>>, vector<1x8x256xf32>,
    return
  }
  func.func @transform_1(%arg0: i32, %arg1: i32, %arg2: memref<48xi32, #tpu.memory_space<smem>>) -> (i32, i32) {
    %c0_i32 = arith.constant 0 : i32
    %c0_i32_0 = arith.constant 0 : i32
    return %arg1, %c0_i32 : i32, i32
  }
  func.func @transform_2(%arg0: i32, %arg1: i32, %arg2: memref<48xi32, #tpu.memory_space<smem>>) -> (i32, i32) {
    %c0_i32 = arith.constant 0 : i32
    %c0_i32_0 = arith.constant 0 : i32
    %c0_i32_1 = arith.constant 0 : i32
    return %c0_i32, %c0_i32_0 : i32, i32
  }
  func.func @transform_3(%arg0: i32, %arg1: i32, %arg2: memref<48xi32, #tpu.memory_space<smem>>) -> (i32, i32, i32) {
    %c0_i32 = arith.constant 0 : i32
    %c0_i32_0 = arith.constant 0 : i32
    return %arg0, %arg1, %c0_i32 : i32, i32, i32
  }
  func.func @transform_4(%arg0: i32, %arg1: i32, %arg2: memref<48xi32, #tpu.memory_space<smem>>) -> (i32, i32) {
    %c0_i32 = arith.constant 0 : i32
    %c0_i32_0 = arith.constant 0 : i32
    %c0_i32_1 = arith.constant 0 : i32
    return %c0_i32, %c0_i32_0 : i32, i32
  }
  func.func @transform_5(%arg0: i32, %arg1: i32, %arg2: memref<48xi32, #tpu.memory_space<smem>>) -> (i32, i32) {
    %c0_i32 = arith.constant 0 : i32
    %c0_i32_0 = arith.constant 0 : i32
    %c0_i32_1 = arith.constant 0 : i32
    return %c0_i32, %c0_i32_0 : i32, i32
  }
  func.func @transform_6(%arg0: i32, %arg1: i32, %arg2: memref<48xi32, #tpu.memory_space<smem>>) -> (i32, i32, i32) {
    %c0_i32 = arith.constant 0 : i32
    %c0_i32_0 = arith.constant 0 : i32
    return %arg0, %arg1, %c0_i32 : i32, i32, i32
  }
}

</mosaic_0001>

<bundles_post_ra>
// kernel: tpu_custom_call.1
= control target key start
LH: loop header
LB: loop body
LE: loop exit
PB: predicated region body
PF: predicated region fallthrough
CT: control target
= control target key end

     0   :  { %s2729_s0 = inlined_call_operand.hbm [shape: s32[48], index: 0, kind: input, shape index: {}]   ;;  %s2730_s1 = inlined_call_operand.hbm [shape: f32[30522,256], index: 1, kind: input, shape index: {}]   ;;  %s2731_s2 = inlined_call_operand.hbm [shape: f32[512,256], index: 2, kind: input, shape index: {}]   ;;  %s2732_s3 = inlined_call_operand.hbm [shape: f32[2,256], index: 3, kind: input, shape index: {}]   ;;  %s2733_s4 = inlined_call_operand.vmem [shape: f32[2,24,1], index: 4, kind: input, shape index: {}]   ;;  %s2734_s5 = inlined_call_operand.hbm [shape: f32[1,256], index: 5, kind: input, shape index: {}]   ;;  %s2735_s6 = inlined_call_operand.hbm [shape: f32[1,256], index: 6, kind: input, shape index: {}]   ;;  %s2736_s7 = inlined_call_operand.hbm [shape: f32[2,24,256], index: 7, kind: output, shape index: {}]  }
   0x1   :  { %2771 = sst [smem:[#allocation57_spill]] %s2730_s1  ;;  %s1283_s26 = scalar_lea.hbm %s2729_s0, 16 }
   0x2   :  { %2772 = sst [smem:[#allocation58_spill]] %s2731_s2  ;;  %p1284_p0 = scmp.ne.s32.totalorder %s2729_s0, %s1283_s26 }
   0x3   :  { %2773 = sst [smem:[#allocation59_spill]] %s2732_s3  ;;  %p1287_p1 = scmp.lt.u32.totalorder %s1283_s26, %s2729_s0 }
   0x4   :  { %2774 = sst [smem:[#allocation60_spill]] %s2733_s4 }
   0x5   :  { %2775 = sst [smem:[#allocation61_spill]] %s2734_s5  ;;  %p1289_p2 = pnand %p1287_p1, %p1284_p0 }
   0x6   :  { %2776 = sst [smem:[#allocation62_spill]] %s2735_s6 }
   0x7   :  { %2777 = sst [smem:[#allocation63_spill]] %s2736_s7 }
   0x8   :  { %1292 = shalt.err (!%p1289_p2)  }
   0x9   :  { %s1927_s8 = smov [#allocation5]  }
   0xa   :  { %13 = dma.hbm_to_smem %s2729_s0, 16, %s1927_s8, [#allocation4] }
   0xb   :  { %1863 = dma.done.wait [#allocation4], 16 }
   0xc   :  { %1864 = vsyncadd [#allocation4], 4294967280 }
   0xd   :  { %15 = sfence }
   0xe   :  { %16 = vsyncpa [#allocation7], 0 }
   0xf   :  { %18 = vsyncpa [#allocation7 + $0x1], 0 }
  0x10   :  { %19 = vsyncpa [#allocation10], 0 }
  0x11   :  { %20 = vsyncpa [#allocation13], 0 }
  0x12   :  { %21 = vsyncpa [#allocation8], 0 }
  0x13   :  { %23 = vsyncpa [#allocation8 + $0x1], 0  ;;  %s1992_s11 = smov 0   ;;  %s1994_s12 = smov 0  }
  0x14   :  { %s1996_s13 = smov 0   ;;  %s1998_s14 = smov 0  }
  0x15   :  { %s2000_s15 = smov 0   ;;  %s2002_s0 = smov 0  }
  0x16   :  { %s2004_s16 = smov 0   ;;  %s2006_s17 = smov 0  }
  0x17   :  { %s2008_s18 = smov 0   ;;  %s2010_s19 = smov 0  }
  0x18   :  { %s2012_s20 = smov 0  }
  0x19 LB: > { %2778 = sst [smem:[#allocation37_spill]] %s1885_s11  ;;  %s1055_s21 = sadd.s32 4294967295, %s1925_s20   ;;  %s1925_s20 = sphi %s2012_s20, %s29_s20   ;;  %s1921_s19 = sphi %s2010_s19, %s2845_s19   ;;  %s1917_s18 = sphi %s2008_s18, %s2844_s18   ;;  %s1913_s17 = sphi %s2006_s17, %s2843_s17   ;;  %s1909_s16 = sphi %s2004_s16, %s2842_s16   ;;  %s1905_s0 = sphi %s2002_s0, %s2841_s0   ;;  %s1901_s15 = sphi %s2000_s15, %s2840_s15   ;;  %s1897_s14 = sphi %s1998_s14, %s2839_s14   ;;  %s1893_s13 = sphi %s1996_s13, %s2838_s13   ;;  %s1889_s12 = sphi %s1994_s12, %s2837_s12   ;;  %s1885_s11 = sphi %s1992_s11, %s2836_s11  }
  0x1a   : > { %2779 = sst [smem:[#allocation38_spill]] %s1889_s12  ;;  %s1056_s22 = sadd.s32 4294967294, %s1925_s20  }
  0x1b   : > { %2780 = sst [smem:[#allocation39_spill]] %s1893_s13  ;;  %p61_p3 = scmp.ne.s32.totalorder %s1901_s15, %s1897_s14 }
  0x1c   : > { %2781 = sst [smem:[#allocation40_spill]] %s1901_s15  ;;  %p2048_p4 = scmp.eq.s32.totalorder %s1055_s21, 0 }
  0x1d   : > { %2782 = sst [smem:[#allocation41_spill]] %s1905_s0  ;;  %p177_p5 = scmp.ne.s32.totalorder %s1893_s13, %s1889_s12 }
  0x1e   : > { %2783 = sst [smem:[#allocation42_spill]] %s1909_s16  ;;  %p178_p6 = scmp.eq.s32.totalorder %s1055_s21, 5 }
  0x1f   : > { %2784 = sst [smem:[#allocation43_spill]] %s1917_s18  ;;  %p2056_p7 = por %p2048_p4, %p61_p3 }
  0x20   : > { %2785 = sst [smem:[#allocation44_spill]] %s1921_s19  ;;  %p183_p8 = scmp.ne.s32.totalorder %s1889_s12, %s1885_s11 }
  0x21   : > { %2786 = sst [smem:[#allocation45_spill]] %s1925_s20  ;;  %p2062_p9 = por %p178_p6, %p177_p5 }
  0x22   : > { %s2787_s23 = scalar_select %p2048_p4, 1, 0 }
  0x23   : > { %s2788_s24 = scalar_select %p2056_p7, 1, 0 }
  0x24   : > { %s2789_s25 = scalar_select %p2062_p9, 1, 0 }
  0x25   : > { %p184_p10 = scmp.eq.s32.totalorder %s1056_s22, 5  ;;  %p1057_p11 = scmp.ge.s32.totalorder %s1925_s20, 1 }
  0x26   : > { %2790 = sst [smem:[#allocation46_spill]] %s2789_s25  ;;  %p191_p12 = scmp.lt.s32.totalorder %s1925_s20, 7 }
  0x27   : > { %p2068_p13 = por %p184_p10, %p183_p8  ;;  %s1928_s28 = smov [#allocation9]  }
  0x28   : > { %p2072_p0 = pnand %p1057_p11, %p191_p12  ;;  %s204_s29 = sshll.u32 %s1928_s28, 4  ;;  %s205_s29 = int_to_ptr.vmem [resolvable:$true] %s204_s29 }
  0x29   : > { %s2791_s26 = scalar_select %p2068_p13, 1, 0 }
  0x2a   : > { %s2793_s27 = scalar_select %p2072_p0, 1, 0 }
  0x2b   : > { %2792 = sst [smem:[#allocation47_spill]] %s2791_s26  ;;  %p1157_p1 = pneg %p2072_p0 }
  0x2c   : > { %s1929_s8 = smov [#allocation11]   ;;  %s1930_s10 = smov [#allocation12]  }
  0x2d   : > { %p2080_p2 = pnand %p1157_p1, %p2048_p4  ;;  %s215_s9 = sshll.u32 %s1929_s8, 4  ;;  %s2084_s9 = int_to_ptr.vmem [resolvable:$true] %s215_s9 }
  0x2e   : > { %s226_s14 = sshll.u32 %s1930_s10, 4  ;;  %s2795_s3 = sld [smem:[#allocation59_spill]]  ;;  %s2086_s14 = int_to_ptr.vmem [resolvable:$true] %s226_s14 }
  0x2f   : > { %p2096_p5 = pneg %p2080_p2 }
  0x34   : > { %s1293_s28 = scalar_lea.hbm %s2795_s3, 64 }
  0x35   : > { %p1294_p3 = scmp.ne.s32.totalorder %s2795_s3, %s1293_s28  ;;  %p1300_p10 = scmp.lt.u32.totalorder %s1293_s28, %s2795_s3 }
  0x37   : > { %p1296_p6 = pnand %p2096_p5, %p1294_p3 }
  0x39   : > { %p1297_p8 = pneg %p1296_p6 }
  0x3b   : > { %p1302_p11 = pnand %p1300_p10, %p1297_p8 }
  0x3d   : > { %1305 = shalt.err (!%p1302_p11)
}
  0x3e   : > { %s1306_s21 = scalar_lea.vmem %s205_s29, 64  ;;  %p1314_p9 = scmp.lt.s32.totalorder %s205_s29, %s205_s29 }
  0x3f   : > { %p1307_p12 = scmp.ne.s32.totalorder %s205_s29, %s1306_s21  ;;  %p1315_p4 = scmp.lt.s32.totalorder %s1306_s21, %s1306_s21 }
  0x41   : > { %p1309_p1 = pnand %p1307_p12, %p2096_p5  ;;  %p1316_p7 = por %p1315_p4, %p1314_p9 }
  0x43   : > { %p1310_p13 = pneg %p1309_p1 }
  0x45   : > { %p1317_p0 = pnand %p1316_p7, %p1310_p13 }
  0x47   : > { %1320 = shalt.err (!%p1317_p0)
}
  0x48   : > { %1160 = dma.hbm_to_vmem [thread:$0]  (!%p2080_p2), %s2795_s3, 64, %s205_s29, [#allocation10]  }
  0x49   : > { %s2797_s5 = sld [smem:[#allocation61_spill]] }
  0x4f   : > { %s1321_s8 = scalar_lea.hbm %s2797_s5, 32 }
  0x50   : > { %p1322_p3 = scmp.ne.s32.totalorder %s2797_s5, %s1321_s8  ;;  %p1328_p7 = scmp.lt.u32.totalorder %s1321_s8, %s2797_s5 }
  0x52   : > { %p1324_p6 = pnand %p1322_p3, %p2096_p5 }
  0x54   : > { %p1325_p4 = pneg %p1324_p6 }
  0x56   : > { %p1330_p9 = pnand %p1328_p7, %p1325_p4 }
  0x58   : > { %1333 = shalt.err (!%p1330_p9)
}
  0x59   : > { %s1334_s29 = scalar_lea.vmem %s2084_s9, 32  ;;  %p1342_p10 = scmp.lt.s32.totalorder %s2084_s9, %s2084_s9 }
  0x5a   : > { %p1335_p13 = scmp.ne.s32.totalorder %s2084_s9, %s1334_s29  ;;  %p1343_p11 = scmp.lt.s32.totalorder %s1334_s29, %s1334_s29 }
  0x5c   : > { %p1337_p0 = pnand %p1335_p13, %p2096_p5  ;;  %p1344_p12 = por %p1343_p11, %p1342_p10 }
  0x5e   : > { %p1338_p8 = pneg %p1337_p0 }
  0x60   : > { %p1345_p1 = pnand %p1344_p12, %p1338_p8 }
  0x62   : > { %1348 = shalt.err (!%p1345_p1)
}
  0x63   : > { %1163 = dma.hbm_to_vmem [thread:$0]  (!%p2080_p2), %s2797_s5, 32, %s2084_s9, [#allocation10]  }
  0x64   : > { %s2798_s6 = sld [smem:[#allocation62_spill]] }
  0x6a   : > { %s1349_s22 = scalar_lea.hbm %s2798_s6, 32 }
  0x6b   : > { %p1350_p3 = scmp.ne.s32.totalorder %s2798_s6, %s1349_s22  ;;  %p1356_p7 = scmp.lt.u32.totalorder %s1349_s22, %s2798_s6 }
  0x6d   : > { %p1352_p6 = pnand %p1350_p3, %p2096_p5 }
  0x6f   : > { %p1353_p4 = pneg %p1352_p6 }
  0x71   : > { %p1358_p9 = pnand %p1356_p7, %p1353_p4 }
  0x73   : > { %1361 = shalt.err (!%p1358_p9)
}
  0x74   : > { %s1362_s9 = scalar_lea.vmem %s2086_s14, 32  ;;  %p1370_p10 = scmp.lt.s32.totalorder %s2086_s14, %s2086_s14 }
  0x75   : > { %p1363_p13 = scmp.ne.s32.totalorder %s2086_s14, %s1362_s9  ;;  %p1371_p11 = scmp.lt.s32.totalorder %s1362_s9, %s1362_s9 }
  0x77   : > { %p1365_p0 = pnand %p1363_p13, %p2096_p5  ;;  %p1372_p12 = por %p1371_p11, %p1370_p10 }
  0x79   : > { %p1366_p8 = pneg %p1365_p0 }
  0x7b   : > { %p1373_p1 = pnand %p1372_p12, %p1366_p8 }
  0x7d   : > { %1376 = shalt.err (!%p1373_p1)
}
  0x7e   : > { %1166 = dma.hbm_to_vmem [thread:$0]  (!%p2080_p2), %s2798_s6, 32, %s2086_s14, [#allocation13]  }
  0x7f   : > { %s38_s7 = sadd.s32 1, %s1917_s18  ;;  %s41_s25 = sadd.s32 1, %s1921_s19 }
  0x80   : > { %p39_p5 = scmp.ge.s32.totalorder %s38_s7, 3  ;;  %s48_s30 = sadd.s32 1, %s1905_s0 }
  0x81   : > { %p55_p3 = scmp.ne.s32.totalorder %s1905_s0, %s1901_s15  ;;  %p56_p6 = scmp.eq.s32.totalorder %s1925_s20, 0 }
  0x82   : > { %s2847_s7 = smov (%p39_p5, %s38_s7), 0  ;;  %s2849_s25 = smov (!%p39_p5, %s41_s25), %s1921_s19 }
  0x83   : > { %2799 = sst [smem:[#allocation48_spill]] %s2847_s7  ;;  %s45_s11 = ssub.s32 %s1917_s18, %s2847_s7 }
  0x84   : > { %p2169_p4 = por %p56_p6, %p55_p3  ;;  %p43_p2 = scmp.ge.s32.totalorder %s2849_s25, 2 }
  0x85   : > { %p46_p7 = scmp.eq.s32.totalorder %s45_s11, 0  ;;  %s167_s14 = sadd.s32 1, %s1893_s13 }
  0x86   : > { %p1178_p9 = scmp.lt.s32.totalorder %s1925_s20, 6  ;;  %s2851_s25 = smov (%p43_p2, %s2849_s25), 0 }
  0x87   : > { %2801 = sst [smem:[#allocation49_spill]] %s2851_s25  ;;  %s162_s28 = ssub.s32 %s1921_s19, %s2851_s25 }
  0x88   : > { %s2178_s22 = scalar_select %p46_p7, %s1905_s0, %s48_s30  }
  0x89   : > { %s237_s8 = sand.u32 1, %s1905_s0   ;;  %s164_s10 = sor.u32 %s162_s28, %s45_s11 }
  0x8a   : > { %2802 = sst [smem:[#allocation50_spill]] %s2178_s22  ;;  %p165_p13 = scmp.eq.s32.totalorder %s164_s10, 0 }
  0x8b   : > { %s1062_s21 = sshll.u32 %s237_s8, 4  ;;  %s1137_s9 = sshll.u32 %s1917_s18, 8 }
  0x8c   : > { %s2185_s29 = scalar_select %p165_p13, %s1893_s13, %s167_s14  }
  0x8d   : > { %s2804_s2 = sld [smem:[#allocation58_spill]]  ;;  %s241_s6 = scalar_lea.vmem [#allocation6], %s1062_s21 }
  0x8e   : > { %2803 = sst [smem:[#allocation51_spill]] %s2185_s29  ;;  %s249_s30 = sshll.u32 %s241_s6, 4  ;;  %s2192_s30 = int_to_ptr.vmem [resolvable:$true] %s249_s30 }
  0x8f   : > { %p2198_p0 = pnand %p1178_p9, %p2169_p4  ;;  %s238_s14 = scalar_lea.sflag [#allocation7], %s237_s8 }
  0x91   : > { %p1379_p10 = pneg %p2198_p0 }
  0x93   : > { %s2190_s5 = scalar_lea.hbm %s2804_s2, %s1137_s9  ;;  %s1382_s26 = scalar_lea.hbm %s2804_s2, 16384 }
  0x94   : > { %s1377_s3 = scalar_lea.hbm %s2190_s5, 256  ;;  %p1383_p1 = scmp.lt.u32.totalorder %s2190_s5, %s2804_s2 }
  0x95   : > { %p1378_p8 = scmp.ne.s32.totalorder %s2190_s5, %s1377_s3  ;;  %p1384_p5 = scmp.lt.u32.totalorder %s1382_s26, %s1377_s3 }
  0x96   : > { %p1386_p6 = scmp.lt.u32.totalorder %s1377_s3, %s2190_s5 }
  0x97   : > { %p1380_p11 = pnand %p1379_p10, %p1378_p8  ;;  %p1385_p3 = por %p1384_p5, %p1383_p1 }
  0x99   : > { %p1381_p12 = pneg %p1380_p11  ;;  %p1387_p4 = por %p1386_p6, %p1385_p3 }
  0x9b   : > { %p1388_p2 = pnand %p1387_p4, %p1381_p12 }
  0x9d   : > { %1391 = shalt.err (!%p1388_p2)
}
  0x9e   : > { %s1392_s8 = scalar_lea.vmem %s2192_s30, 256  ;;  %s1931_s9 = smov [#allocation6]  }
  0x9f   : > { %p1393_p7 = scmp.ne.s32.totalorder %s2192_s30, %s1392_s8  ;;  %s1397_s1 = sshll.u32 %s1931_s9, 4  ;;  %s1398_s1 = int_to_ptr.vmem [resolvable:$false] %s1397_s1 }
  0xa0   : > { %s1399_s6 = scalar_lea.vmem %s1398_s1, 512  ;;  %p1400_p8 = scmp.lt.s32.totalorder %s2192_s30, %s1398_s1 }
  0xa1   : > { %p1395_p9 = pnand %p1393_p7, %p1379_p10  ;;  %p1401_p11 = scmp.lt.s32.totalorder %s1399_s6, %s1392_s8 }
  0xa3   : > { %p1396_p13 = pneg %p1395_p9  ;;  %p1402_p1 = por %p1401_p11, %p1400_p8 }
  0xa5   : > { %p1403_p5 = pnand %p1402_p1, %p1396_p13 }
  0xa7   : > { %1406 = shalt.err (!%p1403_p5)
}
  0xa8   : > { %1170 = dma.hbm_to_vmem [thread:$0]  (!%p2198_p0), %s2190_s5, 256, %s2192_s30, %s238_s14  }
  0xa9   : > { %p2806_p12 = scmp.ne.s32.totalorder %s2793_s27, 0 }
  0xab   : > { %269 = sbr.rel (%p2806_p12) target bundleno = 1121 (0x461), region = 40 }
  0xb2   : > { %s271_s3 = sand.u32 1, %s1901_s15   ;;  %p2808_p10 = scmp.ne.s32.totalorder %s2788_s24, 0 }
  0xb3   : > { %s2230_s28 = sshll.u32 %s271_s3, 4  ;;  %s272_s26 = scalar_lea.sflag [#allocation7], %s271_s3 }
  0xb4   : > { %2807 = sst [smem:[#allocation52_spill]] %s2230_s28 }
  0xb5   : > { %1866 = dma.done.wait (%p2808_p10), %s272_s26, 256  }
  0xb6   : > { %1868 = vsyncadd (%p2808_p10), %s272_s26, 4294967040  ;;  %p2809_p3 = scmp.ne.s32.totalorder %s2787_s23, 0 }
  0xb8   : > { %1870 = dma.done.wait (%p2809_p3), [#allocation10], 96  }
  0xb9   : > { %1872 = vsyncadd (%p2809_p3), [#allocation10], 4294967200 }
  0xba   : > { %1874 = dma.done.wait (%p2809_p3), [#allocation13], 32  }
  0xbb   : > { %1876 = vsyncadd (%p2809_p3), [#allocation13], 4294967264  ;;  %s2749_s5 = sand.u32 1, %s1889_s12   ;;  %p322_p0 = scmp.lt.s32.totalorder %s1913_s17, 1 }
  0xbc   : > { %s1070_s24 = sshll.u32 %s2749_s5, 4  ;;  %p324_p6 = scmp.lt.s32.totalorder %s1909_s16, 2 }
  0xbd   : > { %p330_p4 = scmp.lt.s32.totalorder %s1909_s16, 0  ;;  %s331_s11 = ssub.s32 0, %s1909_s16 }
  0xbe   : > { %s323_s27 = scalar_select %p322_p0, %s1913_s17, 1 }
  0xbf   : > { %s325_s30 = scalar_select %p324_p6, %s1909_s16, 2 }
  0xc0   : > { %s1139_s23 = smul.u32 3, %s323_s27  ;;  %s1072_s14 = smin.u32 %s1909_s16, %s331_s11 }
  0xc1   : > { %s2256_s21 = sadd.s32 1, %s1909_s16  ;;  %s333_s9 = sand.u32 1, %s1072_s14  }
  0xc2   : > { %s327_s8 = sadd.s32 %s1139_s23, %s325_s30  ;;  %s334_s6 = ssub.s32 0, %s333_s9 }
  0xc3   : > { %s1071_s1 = sshll.u32 %s327_s8, 3  ;;  %s2810_s4 = sld [smem:[#allocation60_spill]] }
  0xc4   : > { %s2853_s6 = smov (!%p330_p4, %s334_s6), %s333_s9  ;;  %p337_p2 = scmp.lt.s32.totalorder %s2256_s21, 0 }
  0xc5   : > { %2812 = sst [smem:[#allocation54_spill]] %s2853_s6  ;;  %s338_s27 = ssub.s32 0, %s2256_s21 }
  0xc6   : > { %s1073_s10 = smin.u32 %s338_s27, %s2256_s21  ;;  %s2270_s25 = scalar_lea.vmem [#allocation14], %s1070_s24 }
  0xc7   : > { %s340_s11 = sand.u32 1, %s1073_s10   ;;  %2814 = sst [smem:[#allocation56_spill]] %s2270_s25 }
  0xc8   : > { %s341_s2 = ssub.s32 0, %s340_s11  ;;  %p1074_p7 = scmp.ne.s32.totalorder %s1909_s16, 0 }
  0xc9   : > { %s2261_s5 = scalar_lea.vmem %s2810_s4, %s1071_s1  ;;  %s2855_s2 = smov (!%p337_p2, %s341_s2), %s340_s11 }
  0xca   : > { %2811 = sst [smem:[#allocation53_spill]] %s2261_s5  ;;  %346 = sbr.rel (%p1074_p7) target bundleno = 426 (0x1aa), region = 60 }
  0xcb   : > { %2813 = sst [smem:[#allocation55_spill]] %s2855_s2  ;;  %s2274_s30 = smul.u32 (!%p1074_p7), 24, %s1913_s17 }
  0xcc   : > { %s2277_s23 = sshll.u32 (!%p1074_p7), %s2853_s6, 3 }
  0xcd   : > { %s356_s10 = sshrl.u32 (!%p1074_p7), %s2277_s23, 3  ;;  %s357_s14 = sand.u32 (!%p1074_p7), 7, %s2277_s23  }
  0xce   : > { %s349_s8 = sld [smem:[#allocation5 + %s2274_s30]] (!%p1074_p7)  ;;  %s1078_s9 = sshll.u32 (!%p1074_p7), %s356_s10, 4 }
  0xcf   : > { %s359_s24 = sadd.s32 (!%p1074_p7), %s1078_s9, %s357_s14  ;;  %s367_s26 = sadd.s32 (!%p1074_p7), 1, %s2274_s30 }
  0xd0   : > { %s360_s1 = scalar_lea.vmem (!%p1074_p7), [#allocation2], %s359_s24  ;;  %s2285_s27 = sld [smem:[#allocation5 + %s367_s26]] (!%p1074_p7) }
  0xd1   : > { %s363_s3 = sshll.u32 %s360_s1, 4  ;;  %s369_s11 = sadd.s32 1, %s2277_s23  ;;  %s2282_s3 = int_to_ptr.vmem [resolvable:$true] %s363_s3 }
  0xd2   : > { %s376_s18 = sshrl.u32 %s369_s11, 3  ;;  %s377_s0 = sand.u32 7, %s369_s11  }
  0xd3   : > { %s1081_s29 = sshll.u32 %s376_s18, 4  ;;  %s2815_s14 = sld [smem:[#allocation57_spill]] }
  0xd4   : > { %s350_s4 = sshrl.u32 %s349_s8, 3  ;;  %s351_s7 = sand.u32 7, %s349_s8  }
  0xd5   : > { %s1076_s19 = sshll.u32 %s350_s4, 4  ;;  %s2293_s24 = sadd.s32 %s1081_s29, %s377_s0 }
  0xd6   : > { %s353_s22 = sadd.s32 %s1076_s19, %s351_s7  ;;  %s2296_s1 = scalar_lea.sflag [#allocation3], %s2853_s6 }
  0xd7   : > { %s1077_s15 = sshll.u32 %s353_s22, 4 }
  0xd9   : > { %s2291_s9 = scalar_lea.hbm %s2815_s14, %s1077_s15  ;;  %s2303_s7 = scalar_lea.hbm %s2815_s14, 976896 }
  0xda   : > { %s1407_s8 = scalar_lea.hbm %s2291_s9, 32  ;;  %p1410_p13 = scmp.lt.u32.totalorder %s2291_s9, %s2815_s14 }
  0xdb   : > { %p1408_p9 = scmp.ne.s32.totalorder %s2291_s9, %s1407_s8  ;;  %p1411_p8 = scmp.lt.u32.totalorder %s2303_s7, %s1407_s8 }
  0xdc   : > { %p1413_p1 = scmp.lt.u32.totalorder %s1407_s8, %s2291_s9 }
  0xdd   : > { %p1412_p11 = por %p1411_p8, %p1410_p13 }
  0xdf   : > { %p1414_p5 = por %p1413_p1, %p1412_p11 }
  0xe1   : > { %p1415_p12 = pnand %p1414_p5, %p1408_p9 }
  0xe3   : > { %1418 = shalt.err (!%p1415_p12)  }
  0xe4   : > { %s1419_s13 = scalar_lea.vmem %s2282_s3, 32  ;;  %s1932_s15 = smov [#allocation2]  }
  0xe5   : > { %p1420_p10 = scmp.ne.s32.totalorder %s2282_s3, %s1419_s13  ;;  %s1421_s0 = sshll.u32 %s1932_s15, 4  ;;  %s2313_s0 = int_to_ptr.vmem [resolvable:$false] %s1421_s0 }
  0xe6   : > { %s2316_s29 = scalar_lea.vmem %s2313_s0, 512  ;;  %p1424_p3 = scmp.lt.s32.totalorder %s2282_s3, %s2313_s0 }
  0xe7   : > { %p1425_p0 = scmp.lt.s32.totalorder %s2316_s29, %s1419_s13 }
  0xe9   : > { %p1426_p6 = por %p1425_p0, %p1424_p3 }
  0xeb   : > { %p1427_p4 = pnand %p1426_p6, %p1420_p10 }
  0xed   : > { %1430 = shalt.err (!%p1427_p4)  }
  0xee   : > { %s2766_s26 = smov 128   ;;  %s2768_s11 = smov 1  }
  0xef   : > { %366 = dma.hbm_to_vmem [thread:$0]  %s2291_s9, 32, %s2282_s3, %s2296_s1, %s2766_s26, %s2766_s26, %s2768_s11 }
  0xf0   : > { %s370_s10 = sshrl.u32 %s2285_s27, 3  ;;  %s371_s8 = sand.u32 7, %s2285_s27  }
  0xf1   : > { %s1079_s4 = sshll.u32 %s370_s10, 4  ;;  %s380_s18 = scalar_lea.vmem [#allocation2], %s2293_s24 }
  0xf2   : > { %s373_s19 = sadd.s32 %s1079_s4, %s371_s8  ;;  %s382_s22 = sshll.u32 %s380_s18, 4  ;;  %s383_s22 = int_to_ptr.vmem [resolvable:$true] %s382_s22 }
  0xf3   : > { %s1080_s13 = sshll.u32 %s373_s19, 4  ;;  %s386_s25 = sadd.s32 2, %s2274_s30 }
  0xf4   : > { %s375_s12 = scalar_lea.hbm %s2815_s14, %s1080_s13 }
  0xf5   : > { %s1431_s16 = scalar_lea.hbm %s375_s12, 32  ;;  %p1434_p7 = scmp.lt.u32.totalorder %s375_s12, %s2815_s14 }
  0xf6   : > { %p1432_p2 = scmp.ne.s32.totalorder %s375_s12, %s1431_s16  ;;  %p1435_p9 = scmp.lt.u32.totalorder %s2303_s7, %s1431_s16 }
  0xf7   : > { %p1437_p8 = scmp.lt.u32.totalorder %s1431_s16, %s375_s12 }
  0xf8   : > { %p1436_p13 = por %p1435_p9, %p1434_p7 }
  0xfa   : > { %p1438_p11 = por %p1437_p8, %p1436_p13 }
  0xfc   : > { %p1439_p1 = pnand %p1438_p11, %p1432_p2 }
  0xfe   : > { %1442 = shalt.err (!%p1439_p1)  }
  0xff   : > { %s1443_s3 = scalar_lea.vmem %s383_s22, 32  ;;  %p1448_p12 = scmp.lt.s32.totalorder %s383_s22, %s2313_s0 }
 0x100   : > { %p1444_p5 = scmp.ne.s32.totalorder %s383_s22, %s1443_s3  ;;  %p1449_p10 = scmp.lt.s32.totalorder %s2316_s29, %s1443_s3 }
 0x102   : > { %p1450_p3 = por %p1449_p10, %p1448_p12 }
 0x104   : > { %p1451_p0 = pnand %p1450_p3, %p1444_p5 }
 0x106   : > { %1454 = shalt.err (!%p1451_p0)  }
 0x107   : > { %385 = dma.hbm_to_vmem [thread:$0]  %s375_s12, 32, %s383_s22, %s2296_s1, %s2766_s26, %s2766_s26, %s2768_s11 }
 0x108   : > { %s387_s16 = sld [smem:[#allocation5 + %s386_s25]]  ;;  %s388_s20 = sadd.s32 2, %s2277_s23 }
 0x109   : > { %s395_s28 = sshrl.u32 %s388_s20, 3  ;;  %s396_s6 = sand.u32 7, %s388_s20  }
 0x10a   : > { %s1084_s27 = sshll.u32 %s395_s28, 4  ;;  %s405_s9 = sadd.s32 3, %s2274_s30 }
 0x10b   : > { %s398_s24 = sadd.s32 %s1084_s27, %s396_s6  ;;  %s2346_s10 = sld [smem:[#allocation5 + %s405_s9]] }
 0x10c   : > { %s407_s8 = sadd.s32 3, %s2277_s23  ;;  %s399_s4 = scalar_lea.vmem [#allocation2], %s398_s24 }
 0x10d   : > { %s401_s19 = sshll.u32 %s399_s4, 4  ;;  %s2349_s18 = sshrl.u32 %s407_s8, 3  ;;  %s402_s19 = int_to_ptr.vmem [resolvable:$true] %s401_s19 }
 0x10e   : > { %s389_s13 = sshrl.u32 %s387_s16, 3  ;;  %s390_s15 = sand.u32 7, %s387_s16  }
 0x10f   : > { %s1082_s12 = sshll.u32 %s389_s13, 4  ;;  %s415_s22 = sand.u32 7, %s407_s8  }
 0x110   : > { %s392_s25 = sadd.s32 %s1082_s12, %s390_s15 }
 0x111   : > { %s1083_s3 = sshll.u32 %s392_s25, 4  ;;  %s408_s20 = sshrl.u32 %s2346_s10, 3 }
 0x112   : > { %s394_s27 = scalar_lea.hbm %s2815_s14, %s1083_s3  ;;  %s409_s9 = sand.u32 7, %s2346_s10  }
 0x113   : > { %s1455_s26 = scalar_lea.hbm %s394_s27, 32  ;;  %p1458_p4 = scmp.lt.u32.totalorder %s394_s27, %s2815_s14 }
 0x114   : > { %p1456_p6 = scmp.ne.s32.totalorder %s394_s27, %s1455_s26  ;;  %p1459_p2 = scmp.lt.u32.totalorder %s2303_s7, %s1455_s26 }
 0x115   : > { %p1461_p9 = scmp.lt.u32.totalorder %s1455_s26, %s394_s27 }
 0x116   : > { %p1460_p7 = por %p1459_p2, %p1458_p4 }
 0x118   : > { %p1462_p13 = por %p1461_p9, %p1460_p7 }
 0x11a   : > { %p1463_p8 = pnand %p1462_p13, %p1456_p6 }
 0x11c   : > { %1466 = shalt.err (!%p1463_p8)  }
 0x11d   : > { %s1467_s16 = scalar_lea.vmem %s402_s19, 32  ;;  %p1472_p1 = scmp.lt.s32.totalorder %s402_s19, %s2313_s0 }
 0x11e   : > { %p1468_p11 = scmp.ne.s32.totalorder %s402_s19, %s1467_s16  ;;  %p1473_p5 = scmp.lt.s32.totalorder %s2316_s29, %s1467_s16 }
 0x120   : > { %p1474_p12 = por %p1473_p5, %p1472_p1 }
 0x122   : > { %p1475_p10 = pnand %p1474_p12, %p1468_p11 }
 0x124   : > { %1478 = shalt.err (!%p1475_p10)  }
 0x125   : > { %s2816_s10 = smov 1   ;;  %s2817_s8 = smov 128  }
 0x126   : > { %404 = dma.hbm_to_vmem [thread:$0]  %s394_s27, 32, %s402_s19, %s2296_s1, %s2817_s8, %s2817_s8, %s2816_s10 }
 0x127   : > { %s1085_s26 = sshll.u32 %s408_s20, 4  ;;  %s1087_s11 = sshll.u32 %s2349_s18, 4 }
 0x128   : > { %s411_s4 = sadd.s32 %s1085_s26, %s409_s9  ;;  %s417_s13 = sadd.s32 %s1087_s11, %s415_s22 }
 0x129   : > { %s1086_s15 = sshll.u32 %s411_s4, 4  ;;  %s418_s28 = scalar_lea.vmem [#allocation2], %s417_s13 }
 0x12a   : > { %s413_s3 = scalar_lea.hbm %s2815_s14, %s1086_s15  ;;  %s420_s6 = sshll.u32 %s418_s28, 4  ;;  %s421_s6 = int_to_ptr.vmem [resolvable:$true] %s420_s6 }
 0x12b   : > { %s424_s24 = sadd.s32 4, %s2274_s30  ;;  %s1479_s16 = scalar_lea.hbm %s413_s3, 32 }
 0x12c   : > { %p1480_p3 = scmp.ne.s32.totalorder %s413_s3, %s1479_s16  ;;  %p1482_p0 = scmp.lt.u32.totalorder %s413_s3, %s2815_s14 }
 0x12d   : > { %p1483_p6 = scmp.lt.u32.totalorder %s2303_s7, %s1479_s16  ;;  %p1485_p2 = scmp.lt.u32.totalorder %s1479_s16, %s413_s3 }
 0x12f   : > { %p1484_p4 = por %p1483_p6, %p1482_p0 }
 0x131   : > { %p1486_p7 = por %p1485_p2, %p1484_p4 }
 0x133   : > { %p1487_p9 = pnand %p1486_p7, %p1480_p3 }
 0x135   : > { %1490 = shalt.err (!%p1487_p9)  }
 0x136   : > { %s1491_s19 = scalar_lea.vmem %s421_s6, 32  ;;  %p1496_p8 = scmp.lt.s32.totalorder %s421_s6, %s2313_s0 }
 0x137   : > { %p1492_p13 = scmp.ne.s32.totalorder %s421_s6, %s1491_s19  ;;  %p1497_p11 = scmp.lt.s32.totalorder %s2316_s29, %s1491_s19 }
 0x139   : > { %p1498_p1 = por %p1497_p11, %p1496_p8 }
 0x13b   : > { %p1499_p5 = pnand %p1498_p1, %p1492_p13 }
 0x13d   : > { %1502 = shalt.err (!%p1499_p5)  }
 0x13e   : > { %423 = dma.hbm_to_vmem [thread:$0]  %s413_s3, 32, %s421_s6, %s2296_s1, %s2817_s8, %s2817_s8, %s2816_s10 }
 0x13f   : > { %s425_s2 = sld [smem:[#allocation5 + %s424_s24]]  ;;  %s426_s5 = sadd.s32 4, %s2277_s23 }
 0x140   : > { %s433_s18 = sshrl.u32 %s426_s5, 3  ;;  %s434_s22 = sand.u32 7, %s426_s5  }
 0x141   : > { %s1090_s20 = sshll.u32 %s433_s18, 4  ;;  %s443_s27 = sadd.s32 5, %s2274_s30 }
 0x142   : > { %s436_s9 = sadd.s32 %s1090_s20, %s434_s22  ;;  %s2383_s26 = sld [smem:[#allocation5 + %s443_s27]] }
 0x143   : > { %s445_s11 = sadd.s32 5, %s2277_s23  ;;  %s437_s4 = scalar_lea.vmem [#allocation2], %s436_s9 }
 0x144   : > { %s439_s13 = sshll.u32 %s437_s4, 4  ;;  %s2386_s15 = sshrl.u32 %s445_s11, 3  ;;  %s440_s13 = int_to_ptr.vmem [resolvable:$true] %s439_s13 }
 0x145   : > { %s427_s12 = sshrl.u32 %s425_s2, 3  ;;  %s428_s25 = sand.u32 7, %s425_s2  }
 0x146   : > { %s1088_s3 = sshll.u32 %s427_s12, 4  ;;  %s453_s6 = sand.u32 7, %s445_s11  }
 0x147   : > { %s430_s28 = sadd.s32 %s1088_s3, %s428_s25 }
 0x148   : > { %s1089_s24 = sshll.u32 %s430_s28, 4  ;;  %s446_s16 = sshrl.u32 %s2383_s26, 3 }
 0x149   : > { %s432_s18 = scalar_lea.hbm %s2815_s14, %s1089_s24  ;;  %s447_s22 = sand.u32 7, %s2383_s26  }
 0x14a   : > { %s1503_s20 = scalar_lea.hbm %s432_s18, 32  ;;  %p1506_p10 = scmp.lt.u32.totalorder %s432_s18, %s2815_s14 }
 0x14b   : > { %p1504_p12 = scmp.ne.s32.totalorder %s432_s18, %s1503_s20  ;;  %p1507_p3 = scmp.lt.u32.totalorder %s2303_s7, %s1503_s20 }
 0x14c   : > { %p1509_p6 = scmp.lt.u32.totalorder %s1503_s20, %s432_s18 }
 0x14d   : > { %p1508_p0 = por %p1507_p3, %p1506_p10 }
 0x14f   : > { %p1510_p4 = por %p1509_p6, %p1508_p0 }
 0x151   : > { %p1511_p2 = pnand %p1510_p4, %p1504_p12 }
 0x153   : > { %1514 = shalt.err (!%p1511_p2)  }
 0x154   : > { %s1515_s2 = scalar_lea.vmem %s440_s13, 32  ;;  %p1520_p9 = scmp.lt.s32.totalorder %s440_s13, %s2313_s0 }
 0x155   : > { %p1516_p7 = scmp.ne.s32.totalorder %s440_s13, %s1515_s2  ;;  %p1521_p13 = scmp.lt.s32.totalorder %s2316_s29, %s1515_s2 }
 0x157   : > { %p1522_p8 = por %p1521_p13, %p1520_p9 }
 0x159   : > { %p1523_p11 = pnand %p1522_p8, %p1516_p7 }
 0x15b   : > { %1526 = shalt.err (!%p1523_p11)  }
 0x15c   : > { %442 = dma.hbm_to_vmem [thread:$0]  %s432_s18, 32, %s440_s13, %s2296_s1, %s2817_s8, %s2817_s8, %s2816_s10 }
 0x15d   : > { %s1091_s26 = sshll.u32 %s446_s16, 4  ;;  %s1093_s11 = sshll.u32 %s2386_s15, 4 }
 0x15e   : > { %s449_s4 = sadd.s32 %s1091_s26, %s447_s22  ;;  %s455_s12 = sadd.s32 %s1093_s11, %s453_s6 }
 0x15f   : > { %s1092_s25 = sshll.u32 %s449_s4, 4  ;;  %s456_s19 = scalar_lea.vmem [#allocation2], %s455_s12 }
 0x160   : > { %s451_s24 = scalar_lea.hbm %s2815_s14, %s1092_s25  ;;  %s458_s5 = sshll.u32 %s456_s19, 4  ;;  %s459_s5 = int_to_ptr.vmem [resolvable:$true] %s458_s5 }
 0x161   : > { %s462_s20 = sadd.s32 6, %s2274_s30  ;;  %s1527_s27 = scalar_lea.hbm %s451_s24, 32 }
 0x162   : > { %p1528_p1 = scmp.ne.s32.totalorder %s451_s24, %s1527_s27  ;;  %p1530_p5 = scmp.lt.u32.totalorder %s451_s24, %s2815_s14 }
 0x163   : > { %p1531_p12 = scmp.lt.u32.totalorder %s2303_s7, %s1527_s27  ;;  %p1533_p3 = scmp.lt.u32.totalorder %s1527_s27, %s451_s24 }
 0x165   : > { %p1532_p10 = por %p1531_p12, %p1530_p5 }
 0x167   : > { %p1534_p0 = por %p1533_p3, %p1532_p10 }
 0x169   : > { %p1535_p6 = pnand %p1534_p0, %p1528_p1 }
 0x16b   : > { %1538 = shalt.err (!%p1535_p6)  }
 0x16c   : > { %s1539_s13 = scalar_lea.vmem %s459_s5, 32  ;;  %p1544_p2 = scmp.lt.s32.totalorder %s459_s5, %s2313_s0 }
 0x16d   : > { %p1540_p4 = scmp.ne.s32.totalorder %s459_s5, %s1539_s13  ;;  %p1545_p7 = scmp.lt.s32.totalorder %s2316_s29, %s1539_s13 }
 0x16f   : > { %p1546_p9 = por %p1545_p7, %p1544_p2 }
 0x171   : > { %p1547_p13 = pnand %p1546_p9, %p1540_p4 }
 0x173   : > { %1550 = shalt.err (!%p1547_p13)  }
 0x174   : > { %461 = dma.hbm_to_vmem [thread:$0]  %s451_s24, 32, %s459_s5, %s2296_s1, %s2817_s8, %s2817_s8, %s2816_s10 }
 0x175   : > { %s463_s15 = sld [smem:[#allocation5 + %s462_s20]]  ;;  %s464_s6 = sadd.s32 6, %s2277_s23 }
 0x176   : > { %s471_s16 = sshrl.u32 %s464_s6, 3  ;;  %s472_s18 = sand.u32 7, %s464_s6  }
 0x177   : > { %s1096_s22 = sshll.u32 %s471_s16, 4  ;;  %s481_s26 = sadd.s32 7, %s2274_s30 }
 0x178   : > { %s474_s11 = sadd.s32 %s1096_s22, %s472_s18  ;;  %s2420_s4 = sld [smem:[#allocation5 + %s481_s26]] }
 0x179   : > { %s483_s12 = sadd.s32 7, %s2277_s23  ;;  %s475_s25 = scalar_lea.vmem [#allocation2], %s474_s11 }
 0x17a   : > { %s477_s3 = sshll.u32 %s475_s25, 4  ;;  %s2423_s28 = sshrl.u32 %s483_s12, 3  ;;  %s478_s3 = int_to_ptr.vmem [resolvable:$true] %s477_s3 }
 0x17b   : > { %s465_s19 = sshrl.u32 %s463_s15, 3  ;;  %s466_s27 = sand.u32 7, %s463_s15  }
 0x17c   : > { %s1094_s24 = sshll.u32 %s465_s19, 4  ;;  %s491_s20 = sand.u32 7, %s483_s12  }
 0x17d   : > { %s468_s5 = sadd.s32 %s1094_s24, %s466_s27 }
 0x17e   : > { %s1095_s9 = sshll.u32 %s468_s5, 4  ;;  %s484_s2 = sshrl.u32 %s2420_s4, 3 }
 0x17f   : > { %s470_s6 = scalar_lea.hbm %s2815_s14, %s1095_s9  ;;  %s485_s16 = sand.u32 7, %s2420_s4  }
 0x180   : > { %s1551_s18 = scalar_lea.hbm %s470_s6, 32  ;;  %p1554_p11 = scmp.lt.u32.totalorder %s470_s6, %s2815_s14 }
 0x181   : > { %p1552_p8 = scmp.ne.s32.totalorder %s470_s6, %s1551_s18  ;;  %p1555_p1 = scmp.lt.u32.totalorder %s2303_s7, %s1551_s18 }
 0x182   : > { %p1557_p12 = scmp.lt.u32.totalorder %s1551_s18, %s470_s6 }
 0x183   : > { %p1556_p5 = por %p1555_p1, %p1554_p11 }
 0x185   : > { %p1558_p10 = por %p1557_p12, %p1556_p5 }
 0x187   : > { %p1559_p3 = pnand %p1558_p10, %p1552_p8 }
 0x189   : > { %1562 = shalt.err (!%p1559_p3)  }
 0x18a   : > { %s1563_s15 = scalar_lea.vmem %s478_s3, 32  ;;  %p1568_p6 = scmp.lt.s32.totalorder %s478_s3, %s2313_s0 }
 0x18b   : > { %p1564_p0 = scmp.ne.s32.totalorder %s478_s3, %s1563_s15  ;;  %p1569_p4 = scmp.lt.s32.totalorder %s2316_s29, %s1563_s15 }
 0x18d   : > { %p1570_p2 = por %p1569_p4, %p1568_p6 }
 0x18f   : > { %p1571_p7 = pnand %p1570_p2, %p1564_p0 }
 0x191   : > { %1574 = shalt.err (!%p1571_p7)  }
 0x192   : > { %480 = dma.hbm_to_vmem [thread:$0]  %s470_s6, 32, %s478_s3, %s2296_s1, %s2817_s8, %s2817_s8, %s2816_s10 }
 0x193   : > { %s1097_s26 = sshll.u32 %s484_s2, 4  ;;  %s1099_s11 = sshll.u32 %s2423_s28, 4 }
 0x194   : > { %s487_s4 = sadd.s32 %s1097_s26, %s485_s16  ;;  %s493_s12 = sadd.s32 %s1099_s11, %s491_s20 }
 0x195   : > { %s1098_s25 = sshll.u32 %s487_s4, 4  ;;  %s494_s5 = scalar_lea.vmem [#allocation2], %s493_s12 }
 0x196   : > { %s489_s24 = scalar_lea.hbm %s2815_s14, %s1098_s25  ;;  %s496_s9 = sshll.u32 %s494_s5, 4  ;;  %s497_s9 = int_to_ptr.vmem [resolvable:$true] %s496_s9 }
 0x197   : > { %s1575_s30 = scalar_lea.hbm %s489_s24, 32  ;;  %p1578_p13 = scmp.lt.u32.totalorder %s489_s24, %s2815_s14 }
 0x198   : > { %p1576_p9 = scmp.ne.s32.totalorder %s489_s24, %s1575_s30  ;;  %p1579_p8 = scmp.lt.u32.totalorder %s2303_s7, %s1575_s30 }
 0x199   : > { %p1581_p1 = scmp.lt.u32.totalorder %s1575_s30, %s489_s24 }
 0x19a   : > { %p1580_p11 = por %p1579_p8, %p1578_p13 }
 0x19c   : > { %p1582_p5 = por %p1581_p1, %p1580_p11 }
 0x19e   : > { %p1583_p12 = pnand %p1582_p5, %p1576_p9 }
 0x1a0   : > { %1586 = shalt.err (!%p1583_p12)  }
 0x1a1   : > { %s1587_s3 = scalar_lea.vmem %s497_s9, 32  ;;  %p1592_p3 = scmp.lt.s32.totalorder %s497_s9, %s2313_s0 }
 0x1a2   : > { %p1588_p10 = scmp.ne.s32.totalorder %s497_s9, %s1587_s3  ;;  %p1593_p0 = scmp.lt.s32.totalorder %s2316_s29, %s1587_s3 }
 0x1a4   : > { %p1594_p6 = por %p1593_p0, %p1592_p3 }
 0x1a6   : > { %p1595_p4 = pnand %p1594_p6, %p1588_p10 }
 0x1a8   : > { %1598 = shalt.err (!%p1595_p4)  }
 0x1a9   : > { %499 = dma.hbm_to_vmem [thread:$0]  %s489_s24, 32, %s497_s9, %s2296_s1, %s2817_s8, %s2817_s8, %s2816_s10 }
 0x1aa PF: > { %p1100_p2 = scmp.ge.s32.totalorder %s2256_s21, 3 }
 0x1ab   : > { %s2818_s14 = sld [smem:[#allocation55_spill]] (!%p1100_p2)  ;;  %s504_s7 = smul.u32 (!%p1100_p2), 3, %s1913_s17 }
 0x1ac   : > { %503 = sbr.rel (%p1100_p2) target bundleno = 650 (0x28a), region = 64  ;;  %s2819_s30 = sld [smem:[#allocation57_spill]] (!%p1100_p2) }
 0x1ad   : > { %s505_s20 = sadd.s32 (!%p1100_p2), %s504_s7, %s2256_s21 }
 0x1ae   : > { %s2462_s6 = sshll.u32 (!%p1100_p2), %s505_s20, 3 }
 0x1af   : > { %s508_s10 = sld [smem:[#allocation5 + %s2462_s6]] (!%p1100_p2)  ;;  %s526_s23 = sadd.s32 (!%p1100_p2), 1, %s2462_s6 }
 0x1b0   : > { %s2468_s22 = sld [smem:[#allocation5 + %s526_s23]] (!%p1100_p2) }
 0x1b1   : > { %s2457_s28 = sshll.u32 (!%p1100_p2), %s2818_s14, 3  ;;  %s2480_s3 = scalar_lea.sflag (!%p1100_p2), [#allocation3], %s2818_s14 }
 0x1b2   : > { %s515_s0 = sshrl.u32 (!%p1100_p2), %s2457_s28, 3  ;;  %s516_s29 = sand.u32 (!%p1100_p2), 7, %s2457_s28  }
 0x1b3   : > { %s1105_s2 = sshll.u32 %s515_s0, 4  ;;  %s528_s15 = sadd.s32 1, %s2457_s28 }
 0x1b4   : > { %s518_s1 = sadd.s32 %s1105_s2, %s516_s29  ;;  %s535_s26 = sshrl.u32 %s528_s15, 3 }
 0x1b5   : > { %s519_s8 = scalar_lea.vmem [#allocation2], %s518_s1  ;;  %s536_s11 = sand.u32 7, %s528_s15  }
 0x1b6   : > { %s522_s16 = sshll.u32 %s519_s8, 4  ;;  %s509_s21 = sshrl.u32 %s508_s10, 3  ;;  %s2465_s16 = int_to_ptr.vmem [resolvable:$true] %s522_s16 }
 0x1b7   : > { %s510_s4 = sand.u32 7, %s508_s10   ;;  %s1103_s12 = sshll.u32 %s509_s21, 4 }
 0x1b8   : > { %s1108_s25 = sshll.u32 %s535_s26, 4  ;;  %s512_s19 = sadd.s32 %s1103_s12, %s510_s4 }
 0x1b9   : > { %s2471_s27 = sadd.s32 %s1108_s25, %s536_s11  ;;  %s1104_s24 = sshll.u32 %s512_s19, 4 }
 0x1ba   : > { %s2476_s13 = scalar_lea.hbm %s2819_s30, %s1104_s24  ;;  %s529_s18 = sshrl.u32 %s2468_s22, 3 }
 0x1bb   : > { %s1599_s7 = scalar_lea.hbm %s2476_s13, 32  ;;  %s2487_s20 = scalar_lea.hbm %s2819_s30, 976896 }
 0x1bc   : > { %p1600_p7 = scmp.ne.s32.totalorder %s2476_s13, %s1599_s7  ;;  %p1602_p9 = scmp.lt.u32.totalorder %s2476_s13, %s2819_s30 }
 0x1bd   : > { %p1603_p13 = scmp.lt.u32.totalorder %s2487_s20, %s1599_s7  ;;  %p1605_p11 = scmp.lt.u32.totalorder %s1599_s7, %s2476_s13 }
 0x1bf   : > { %p1604_p8 = por %p1603_p13, %p1602_p9 }
 0x1c1   : > { %p1606_p1 = por %p1605_p11, %p1604_p8 }
 0x1c3   : > { %p1607_p5 = pnand %p1606_p1, %p1600_p7 }
 0x1c5   : > { %1610 = shalt.err (!%p1607_p5)  }
 0x1c6   : > { %s1611_s14 = scalar_lea.vmem %s2465_s16, 32  ;;  %s1935_s10 = smov [#allocation2]  }
 0x1c7   : > { %p1612_p12 = scmp.ne.s32.totalorder %s2465_s16, %s1611_s14  ;;  %s1613_s8 = sshll.u32 %s1935_s10, 4  ;;  %s2497_s8 = int_to_ptr.vmem [resolvable:$false] %s1613_s8 }
 0x1c8   : > { %s2500_s23 = scalar_lea.vmem %s2497_s8, 512  ;;  %p1616_p10 = scmp.lt.s32.totalorder %s2465_s16, %s2497_s8 }
 0x1c9   : > { %p1617_p3 = scmp.lt.s32.totalorder %s2500_s23, %s1611_s14 }
 0x1cb   : > { %p1618_p0 = por %p1617_p3, %p1616_p10 }
 0x1cd   : > { %p1619_p6 = pnand %p1618_p0, %p1612_p12 }
 0x1cf   : > { %1622 = shalt.err (!%p1619_p6)  }
 0x1d0   : > { %s1936_s15 = smov 128   ;;  %s1937_s26 = smov 1  }
 0x1d1   : > { %525 = dma.hbm_to_vmem [thread:$0]  %s2476_s13, 32, %s2465_s16, %s2480_s3, %s1936_s15, %s1936_s15, %s1937_s26 }
 0x1d2   : > { %s530_s11 = sand.u32 7, %s2468_s22   ;;  %s1106_s21 = sshll.u32 %s529_s18, 4 }
 0x1d3   : > { %s532_s4 = sadd.s32 %s1106_s21, %s530_s11  ;;  %s539_s12 = scalar_lea.vmem [#allocation2], %s2471_s27 }
 0x1d4   : > { %s541_s25 = sshll.u32 %s539_s12, 4  ;;  %s1107_s19 = sshll.u32 %s532_s4, 4  ;;  %s542_s25 = int_to_ptr.vmem [resolvable:$true] %s541_s25 }
 0x1d5   : > { %s534_s9 = scalar_lea.hbm %s2819_s30, %s1107_s19  ;;  %s545_s7 = sadd.s32 2, %s2462_s6 }
 0x1d6   : > { %s1623_s0 = scalar_lea.hbm %s534_s9, 32  ;;  %p1626_p2 = scmp.lt.u32.totalorder %s534_s9, %s2819_s30 }
 0x1d7   : > { %p1624_p4 = scmp.ne.s32.totalorder %s534_s9, %s1623_s0  ;;  %p1627_p7 = scmp.lt.u32.totalorder %s2487_s20, %s1623_s0 }
 0x1d8   : > { %p1629_p13 = scmp.lt.u32.totalorder %s1623_s0, %s534_s9 }
 0x1d9   : > { %p1628_p9 = por %p1627_p7, %p1626_p2 }
 0x1db   : > { %p1630_p8 = por %p1629_p13, %p1628_p9 }
 0x1dd   : > { %p1631_p11 = pnand %p1630_p8, %p1624_p4 }
 0x1df   : > { %1634 = shalt.err (!%p1631_p11)  }
 0x1e0   : > { %s1635_s16 = scalar_lea.vmem %s542_s25, 32  ;;  %p1640_p5 = scmp.lt.s32.totalorder %s542_s25, %s2497_s8 }
 0x1e1   : > { %p1636_p1 = scmp.ne.s32.totalorder %s542_s25, %s1635_s16  ;;  %p1641_p12 = scmp.lt.s32.totalorder %s2500_s23, %s1635_s16 }
 0x1e3   : > { %p1642_p10 = por %p1641_p12, %p1640_p5 }
 0x1e5   : > { %p1643_p3 = pnand %p1642_p10, %p1636_p1 }
 0x1e7   : > { %1646 = shalt.err (!%p1643_p3)  }
 0x1e8   : > { %544 = dma.hbm_to_vmem [thread:$0]  %s534_s9, 32, %s542_s25, %s2480_s3, %s1936_s15, %s1936_s15, %s1937_s26 }
 0x1e9   : > { %s546_s22 = sld [smem:[#allocation5 + %s545_s7]]  ;;  %s547_s27 = sadd.s32 2, %s2457_s28 }
 0x1ea   : > { %s554_s13 = sshrl.u32 %s547_s27, 3  ;;  %s555_s18 = sand.u32 7, %s547_s27  }
 0x1eb   : > { %s1111_s1 = sshll.u32 %s554_s13, 4  ;;  %s564_s14 = sadd.s32 3, %s2462_s6 }
 0x1ec   : > { %s557_s10 = sadd.s32 %s1111_s1, %s555_s18  ;;  %s2531_s11 = sld [smem:[#allocation5 + %s564_s14]] }
 0x1ed   : > { %s566_s21 = sadd.s32 3, %s2457_s28  ;;  %s558_s4 = scalar_lea.vmem [#allocation2], %s557_s10 }
 0x1ee   : > { %s560_s12 = sshll.u32 %s558_s4, 4  ;;  %s2534_s19 = sshrl.u32 %s566_s21, 3  ;;  %s561_s12 = int_to_ptr.vmem [resolvable:$true] %s560_s12 }
 0x1ef   : > { %s548_s24 = sshrl.u32 %s546_s22, 3  ;;  %s549_s5 = sand.u32 7, %s546_s22  }
 0x1f0   : > { %s1109_s25 = sshll.u32 %s548_s24, 4  ;;  %s574_s7 = sand.u32 7, %s566_s21  }
 0x1f1   : > { %s551_s9 = sadd.s32 %s1109_s25, %s549_s5 }
 0x1f2   : > { %s1110_s0 = sshll.u32 %s551_s9, 4  ;;  %s567_s29 = sshrl.u32 %s2531_s11, 3 }
 0x1f3   : > { %s553_s27 = scalar_lea.hbm %s2819_s30, %s1110_s0  ;;  %s568_s13 = sand.u32 7, %s2531_s11  }
 0x1f4   : > { %s1647_s18 = scalar_lea.hbm %s553_s27, 32  ;;  %p1650_p6 = scmp.lt.u32.totalorder %s553_s27, %s2819_s30 }
 0x1f5   : > { %p1648_p0 = scmp.ne.s32.totalorder %s553_s27, %s1647_s18  ;;  %p1651_p4 = scmp.lt.u32.totalorder %s2487_s20, %s1647_s18 }
 0x1f6   : > { %p1653_p7 = scmp.lt.u32.totalorder %s1647_s18, %s553_s27 }
 0x1f7   : > { %p1652_p2 = por %p1651_p4, %p1650_p6 }
 0x1f9   : > { %p1654_p9 = por %p1653_p7, %p1652_p2 }
 0x1fb   : > { %p1655_p13 = pnand %p1654_p9, %p1648_p0 }
 0x1fd   : > { %1658 = shalt.err (!%p1655_p13)  }
 0x1fe   : > { %s1659_s22 = scalar_lea.vmem %s561_s12, 32  ;;  %p1664_p11 = scmp.lt.s32.totalorder %s561_s12, %s2497_s8 }
 0x1ff   : > { %p1660_p8 = scmp.ne.s32.totalorder %s561_s12, %s1659_s22  ;;  %p1665_p1 = scmp.lt.s32.totalorder %s2500_s23, %s1659_s22 }
 0x201   : > { %p1666_p5 = por %p1665_p1, %p1664_p11 }
 0x203   : > { %p1667_p12 = pnand %p1666_p5, %p1660_p8 }
 0x205   : > { %1670 = shalt.err (!%p1667_p12)  }
 0x206   : > { %563 = dma.hbm_to_vmem [thread:$0]  %s553_s27, 32, %s561_s12, %s2480_s3, %s1936_s15, %s1936_s15, %s1937_s26 }
 0x207   : > { %s1112_s10 = sshll.u32 %s567_s29, 4  ;;  %s1114_s11 = sshll.u32 %s2534_s19, 4 }
 0x208   : > { %s570_s21 = sadd.s32 %s1112_s10, %s568_s13  ;;  %s576_s4 = sadd.s32 %s1114_s11, %s574_s7 }
 0x209   : > { %s1113_s24 = sshll.u32 %s570_s21, 4  ;;  %s577_s0 = scalar_lea.vmem [#allocation2], %s576_s4 }
 0x20a   : > { %s572_s9 = scalar_lea.hbm %s2819_s30, %s1113_s24  ;;  %s579_s2 = sshll.u32 %s577_s0, 4  ;;  %s580_s2 = int_to_ptr.vmem [resolvable:$true] %s579_s2 }
 0x20b   : > { %s583_s16 = sadd.s32 4, %s2462_s6  ;;  %s1671_s18 = scalar_lea.hbm %s572_s9, 32 }
 0x20c   : > { %p1672_p10 = scmp.ne.s32.totalorder %s572_s9, %s1671_s18  ;;  %p1674_p3 = scmp.lt.u32.totalorder %s572_s9, %s2819_s30 }
 0x20d   : > { %p1675_p0 = scmp.lt.u32.totalorder %s2487_s20, %s1671_s18  ;;  %p1677_p4 = scmp.lt.u32.totalorder %s1671_s18, %s572_s9 }
 0x20f   : > { %p1676_p6 = por %p1675_p0, %p1674_p3 }
 0x211   : > { %p1678_p2 = por %p1677_p4, %p1676_p6 }
 0x213   : > { %p1679_p7 = pnand %p1678_p2, %p1672_p10 }
 0x215   : > { %1682 = shalt.err (!%p1679_p7)  }
 0x216   : > { %s1683_s12 = scalar_lea.vmem %s580_s2, 32  ;;  %p1688_p13 = scmp.lt.s32.totalorder %s580_s2, %s2497_s8 }
 0x217   : > { %p1684_p9 = scmp.ne.s32.totalorder %s580_s2, %s1683_s12  ;;  %p1689_p8 = scmp.lt.s32.totalorder %s2500_s23, %s1683_s12 }
 0x219   : > { %p1690_p11 = por %p1689_p8, %p1688_p13 }
 0x21b   : > { %p1691_p1 = pnand %p1690_p11, %p1684_p9 }
 0x21d   : > { %1694 = shalt.err (!%p1691_p1)  }
 0x21e   : > { %582 = dma.hbm_to_vmem [thread:$0]  %s572_s9, 32, %s580_s2, %s2480_s3, %s1936_s15, %s1936_s15, %s1937_s26 }
 0x21f   : > { %s584_s19 = sld [smem:[#allocation5 + %s583_s16]]  ;;  %s585_s7 = sadd.s32 4, %s2457_s28 }
 0x220   : > { %s592_s29 = sshrl.u32 %s585_s7, 3  ;;  %s593_s27 = sand.u32 7, %s585_s7  }
 0x221   : > { %s1117_s13 = sshll.u32 %s592_s29, 4  ;;  %s602_s22 = sadd.s32 5, %s2462_s6 }
 0x222   : > { %s595_s10 = sadd.s32 %s1117_s13, %s593_s27  ;;  %s2568_s11 = sld [smem:[#allocation5 + %s602_s22]] }
 0x223   : > { %s604_s21 = sadd.s32 5, %s2457_s28  ;;  %s596_s4 = scalar_lea.vmem [#allocation2], %s595_s10 }
 0x224   : > { %s598_s24 = sshll.u32 %s596_s4, 4  ;;  %s2571_s5 = sshrl.u32 %s604_s21, 3  ;;  %s599_s24 = int_to_ptr.vmem [resolvable:$true] %s598_s24 }
 0x225   : > { %s586_s25 = sshrl.u32 %s584_s19, 3  ;;  %s587_s0 = sand.u32 7, %s584_s19  }
 0x226   : > { %s1115_s9 = sshll.u32 %s586_s25, 4  ;;  %s612_s16 = sand.u32 7, %s604_s21  }
 0x227   : > { %s589_s2 = sadd.s32 %s1115_s9, %s587_s0 }
 0x228   : > { %s1116_s18 = sshll.u32 %s589_s2, 4  ;;  %s605_s1 = sshrl.u32 %s2568_s11, 3 }
 0x229   : > { %s591_s7 = scalar_lea.hbm %s2819_s30, %s1116_s18  ;;  %s606_s29 = sand.u32 7, %s2568_s11  }
 0x22a   : > { %s1695_s27 = scalar_lea.hbm %s591_s7, 32  ;;  %p1698_p12 = scmp.lt.u32.totalorder %s591_s7, %s2819_s30 }
 0x22b   : > { %p1696_p5 = scmp.ne.s32.totalorder %s591_s7, %s1695_s27  ;;  %p1699_p10 = scmp.lt.u32.totalorder %s2487_s20, %s1695_s27 }
 0x22c   : > { %p1701_p0 = scmp.lt.u32.totalorder %s1695_s27, %s591_s7 }
 0x22d   : > { %p1700_p3 = por %p1699_p10, %p1698_p12 }
 0x22f   : > { %p1702_p6 = por %p1701_p0, %p1700_p3 }
 0x231   : > { %p1703_p4 = pnand %p1702_p6, %p1696_p5 }
 0x233   : > { %1706 = shalt.err (!%p1703_p4)  }
 0x234   : > { %s1707_s19 = scalar_lea.vmem %s599_s24, 32  ;;  %p1712_p7 = scmp.lt.s32.totalorder %s599_s24, %s2497_s8 }
 0x235   : > { %p1708_p2 = scmp.ne.s32.totalorder %s599_s24, %s1707_s19  ;;  %p1713_p9 = scmp.lt.s32.totalorder %s2500_s23, %s1707_s19 }
 0x237   : > { %p1714_p13 = por %p1713_p9, %p1712_p7 }
 0x239   : > { %p1715_p8 = pnand %p1714_p13, %p1708_p2 }
 0x23b   : > { %1718 = shalt.err (!%p1715_p8)  }
 0x23c   : > { %601 = dma.hbm_to_vmem [thread:$0]  %s591_s7, 32, %s599_s24, %s2480_s3, %s1936_s15, %s1936_s15, %s1937_s26 }
 0x23d   : > { %s1118_s10 = sshll.u32 %s605_s1, 4  ;;  %s1120_s11 = sshll.u32 %s2571_s5, 4 }
 0x23e   : > { %s608_s21 = sadd.s32 %s1118_s10, %s606_s29  ;;  %s614_s4 = sadd.s32 %s1120_s11, %s612_s16 }
 0x23f   : > { %s1119_s25 = sshll.u32 %s608_s21, 4  ;;  %s615_s18 = scalar_lea.vmem [#allocation2], %s614_s4 }
 0x240   : > { %s610_s2 = scalar_lea.hbm %s2819_s30, %s1119_s25  ;;  %s617_s14 = sshll.u32 %s615_s18, 4  ;;  %s618_s14 = int_to_ptr.vmem [resolvable:$true] %s617_s14 }
 0x241   : > { %s621_s12 = sadd.s32 6, %s2462_s6  ;;  %s1719_s27 = scalar_lea.hbm %s610_s2, 32 }
 0x242   : > { %p1720_p11 = scmp.ne.s32.totalorder %s610_s2, %s1719_s27  ;;  %p1722_p1 = scmp.lt.u32.totalorder %s610_s2, %s2819_s30 }
 0x243   : > { %p1723_p5 = scmp.lt.u32.totalorder %s2487_s20, %s1719_s27  ;;  %p1725_p10 = scmp.lt.u32.totalorder %s1719_s27, %s610_s2 }
 0x245   : > { %p1724_p12 = por %p1723_p5, %p1722_p1 }
 0x247   : > { %p1726_p3 = por %p1725_p10, %p1724_p12 }
 0x249   : > { %p1727_p0 = pnand %p1726_p3, %p1720_p11 }
 0x24b   : > { %1730 = shalt.err (!%p1727_p0)  }
 0x24c   : > { %s1731_s24 = scalar_lea.vmem %s618_s14, 32  ;;  %p1736_p4 = scmp.lt.s32.totalorder %s618_s14, %s2497_s8 }
 0x24d   : > { %p1732_p6 = scmp.ne.s32.totalorder %s618_s14, %s1731_s24  ;;  %p1737_p2 = scmp.lt.s32.totalorder %s2500_s23, %s1731_s24 }
 0x24f   : > { %p1738_p7 = por %p1737_p2, %p1736_p4 }
 0x251   : > { %p1739_p9 = pnand %p1738_p7, %p1732_p6 }
 0x253   : > { %1742 = shalt.err (!%p1739_p9)  }
 0x254   : > { %620 = dma.hbm_to_vmem [thread:$0]  %s610_s2, 32, %s618_s14, %s2480_s3, %s1936_s15, %s1936_s15, %s1937_s26 }
 0x255   : > { %s622_s5 = sld [smem:[#allocation5 + %s621_s12]]  ;;  %s623_s16 = sadd.s32 6, %s2457_s28 }
 0x256   : > { %s630_s1 = sshrl.u32 %s623_s16, 3  ;;  %s631_s7 = sand.u32 7, %s623_s16  }
 0x257   : > { %s1123_s29 = sshll.u32 %s630_s1, 4  ;;  %s640_s19 = sadd.s32 7, %s2462_s6 }
 0x258   : > { %s633_s10 = sadd.s32 %s1123_s29, %s631_s7  ;;  %s2605_s11 = sld [smem:[#allocation5 + %s640_s19]] }
 0x259   : > { %s642_s21 = sadd.s32 7, %s2457_s28  ;;  %s634_s4 = scalar_lea.vmem [#allocation2], %s633_s10 }
 0x25a   : > { %s636_s25 = sshll.u32 %s634_s4, 4  ;;  %s2608_s0 = sshrl.u32 %s642_s21, 3  ;;  %s637_s25 = int_to_ptr.vmem [resolvable:$true] %s636_s25 }
 0x25b   : > { %s624_s9 = sshrl.u32 %s622_s5, 3  ;;  %s625_s18 = sand.u32 7, %s622_s5  }
 0x25c   : > { %s1121_s2 = sshll.u32 %s624_s9, 4  ;;  %s650_s12 = sand.u32 7, %s642_s21  }
 0x25d   : > { %s627_s14 = sadd.s32 %s1121_s2, %s625_s18 }
 0x25e   : > { %s1122_s27 = sshll.u32 %s627_s14, 4  ;;  %s643_s13 = sshrl.u32 %s2605_s11, 3 }
 0x25f   : > { %s629_s24 = scalar_lea.hbm %s2819_s30, %s1122_s27  ;;  %s644_s16 = sand.u32 7, %s2605_s11  }
 0x260   : > { %s1743_s1 = scalar_lea.hbm %s629_s24, 32  ;;  %p1746_p8 = scmp.lt.u32.totalorder %s629_s24, %s2819_s30 }
 0x261   : > { %p1744_p13 = scmp.ne.s32.totalorder %s629_s24, %s1743_s1  ;;  %p1747_p11 = scmp.lt.u32.totalorder %s2487_s20, %s1743_s1 }
 0x262   : > { %p1749_p5 = scmp.lt.u32.totalorder %s1743_s1, %s629_s24 }
 0x263   : > { %p1748_p1 = por %p1747_p11, %p1746_p8 }
 0x265   : > { %p1750_p12 = por %p1749_p5, %p1748_p1 }
 0x267   : > { %p1751_p10 = pnand %p1750_p12, %p1744_p13 }
 0x269   : > { %1754 = shalt.err (!%p1751_p10)  }
 0x26a   : > { %s1755_s5 = scalar_lea.vmem %s637_s25, 32  ;;  %p1760_p0 = scmp.lt.s32.totalorder %s637_s25, %s2497_s8 }
 0x26b   : > { %p1756_p3 = scmp.ne.s32.totalorder %s637_s25, %s1755_s5  ;;  %p1761_p6 = scmp.lt.s32.totalorder %s2500_s23, %s1755_s5 }
 0x26d   : > { %p1762_p4 = por %p1761_p6, %p1760_p0 }
 0x26f   : > { %p1763_p2 = pnand %p1762_p4, %p1756_p3 }
 0x271   : > { %1766 = shalt.err (!%p1763_p2)  }
 0x272   : > { %639 = dma.hbm_to_vmem [thread:$0]  %s629_s24, 32, %s637_s25, %s2480_s3, %s1936_s15, %s1936_s15, %s1937_s26 }
 0x273   : > { %s1124_s29 = sshll.u32 %s643_s13, 4  ;;  %s1126_s19 = sshll.u32 %s2608_s0, 4 }
 0x274   : > { %s646_s10 = sadd.s32 %s1124_s29, %s644_s16  ;;  %s652_s11 = sadd.s32 %s1126_s19, %s650_s12 }
 0x275   : > { %s1125_s21 = sshll.u32 %s646_s10, 4  ;;  %s653_s2 = scalar_lea.vmem [#allocation2], %s652_s11 }
 0x276   : > { %s648_s18 = scalar_lea.hbm %s2819_s30, %s1125_s21  ;;  %s655_s14 = sshll.u32 %s653_s2, 4  ;;  %s656_s14 = int_to_ptr.vmem [resolvable:$true] %s655_s14 }
 0x277   : > { %s1767_s27 = scalar_lea.hbm %s648_s18, 32  ;;  %p1770_p9 = scmp.lt.u32.totalorder %s648_s18, %s2819_s30 }
 0x278   : > { %p1768_p7 = scmp.ne.s32.totalorder %s648_s18, %s1767_s27  ;;  %p1771_p13 = scmp.lt.u32.totalorder %s2487_s20, %s1767_s27 }
 0x279   : > { %p1773_p11 = scmp.lt.u32.totalorder %s1767_s27, %s648_s18 }
 0x27a   : > { %p1772_p8 = por %p1771_p13, %p1770_p9 }
 0x27c   : > { %p1774_p1 = por %p1773_p11, %p1772_p8 }
 0x27e   : > { %p1775_p5 = pnand %p1774_p1, %p1768_p7 }
 0x280   : > { %1778 = shalt.err (!%p1775_p5)  }
 0x281   : > { %s1779_s25 = scalar_lea.vmem %s656_s14, 32  ;;  %p1784_p10 = scmp.lt.s32.totalorder %s656_s14, %s2497_s8 }
 0x282   : > { %p1780_p12 = scmp.ne.s32.totalorder %s656_s14, %s1779_s25  ;;  %p1785_p3 = scmp.lt.s32.totalorder %s2500_s23, %s1779_s25 }
 0x284   : > { %p1786_p0 = por %p1785_p3, %p1784_p10 }
 0x286   : > { %p1787_p6 = pnand %p1786_p0, %p1780_p12 }
 0x288   : > { %1790 = shalt.err (!%p1787_p6)  }
 0x289   : > { %658 = dma.hbm_to_vmem [thread:$0]  %s648_s18, 32, %s656_s14, %s2480_s3, %s1936_s15, %s1936_s15, %s1937_s26 }
 0x28a PF: > { %s2820_s30 = sld [smem:[#allocation53_spill]]  ;;  %s2821_s20 = sld [smem:[#allocation54_spill]]  ;;  %v1938_v1 = vmov 0   ;;  %v2644_v2 = vld [vmem:[#allocation11] sm:$0x3]  ;;  %v666_v4 = vlaneseq }
 0x28b   : > { %1280 = vset.pattern.permute.xlu0 %v1938_v1  ;;  %v2646_v3 = vld [vmem:[#allocation12] sm:$0x3]  ;;  %s2822_s23 = sld [smem:[#allocation52_spill]]  ;;  %v659_v5 = vld [vmem:[#allocation9] sm:$0xf] }
 0x28c   : > { %v667_v6 = vshrl.u32 %v666_v4, 7  ;;  %v661_v7 = vrot.slane %v659_v5, 7 }
 0x28e   : > { %v668_v8 = vsub.s32 0, %v667_v6  ;;  %v672_v9 = vsub.s32 2, %v667_v6  ;;  %v663_v10 = vsub.f32 %v659_v5, %v661_v7  ;;  %v695_v11 = vsub.s32 1, %v667_v6 }
 0x28f   : > { %v699_v12 = vsub.s32 3, %v667_v6 }
 0x290   : > { %v686_v0 = vld [vmem:[%s2820_s30] sm:$0xff]  ;;  %s1127_s0 = sshll.u32 %s2821_s20, 3  ;;  %v669_v13 = vrot.slane %v659_v5, %v668_v8  ;;  %v673_v14 = vrot.slane %v659_v5, %v672_v9  ;;  %v696_v15 = vrot.slane %v663_v10, %v695_v11  ;;  %s723_s13 = scalar_lea.sflag [#allocation3], %s2821_s20 }
 0x291   : > { %689 = vperm.xlu0 %1280, %v686_v0   ;;  %s2641_s12 = sshra.s32 %s1127_s0, 3  ;;  %v700_v16 = vrot.slane %v663_v10, %v699_v12  ;;  %s2823_s3 = scalar_lea.vmem [#allocation6], %s2822_s23 }
 0x292   : > { %s1138_s8 = sshll.u32 %s2641_s12, 4  ;;  %v679_v17 = vrot.slane %v669_v13, %v668_v8  ;;  %v683_v18 = vrot.slane %v673_v14, %v668_v8  ;;  %v664_v19 = vld [vmem:[%s2823_s3] sm:$0xff]  ;;  %s2824_s15 = smov %s2823_s3  ;;  %v706_v21 = vrot.slane %v696_v15, %v695_v11 }
 0x293   : > { %v665_v20 = vld [vmem:[%s2824_s15 + $0x8] sm:$0xff]  ;;  %v710_v22 = vrot.slane %v700_v16, %v695_v11  ;;  %s722_s26 = scalar_lea.vmem [#allocation2], %s1138_s8 }
 0x294   : > { %v684_v23 = vadd.f32 %v679_v17, %v664_v19  ;;  %v685_v24 = vadd.f32 %v683_v18, %v665_v20 }
 0x310   : > { %v690_v25 = vpop.permute.xlu0 %689 }
 0x311   : > { %v711_v26 = vmul.f32 %v706_v21, %v690_v25  ;;  %v712_v27 = vmul.f32 %v710_v22, %v690_v25 }
 0x313   : > { %v713_v28 = vadd.f32 %v711_v26, %v684_v23  ;;  %v714_v29 = vadd.f32 %v712_v27, %v685_v24 }
 0x314   : > { %1877 = dma.done.wait %s723_s13, 256 }
 0x315   : > { %1878 = vsyncadd %s723_s13, 4294967040  ;;  %v728_v30 = vld [vmem:[%s722_s26] sm:$0xff]  ;;  %v729_v31 = vld [vmem:[%s722_s26 + $0x8] sm:$0xff]  ;;  %s2825_s24 = sld [smem:[#allocation42_spill]]  ;;  %s1140_s1 = smul.u32 6, %s1913_s17  ;;  %v753_v45 = vrot.slane %v2644_v2, %v668_v8  ;;  %v757_v46 = vrot.slane %v2644_v2, %v695_v11  ;;  %v766_v50 = vrot.slane %v2646_v3, %v668_v8  ;;  %v770_v51 = vrot.slane %v2646_v3, %v695_v11 }
 0x316   : > { %v730_v32 = vadd.f32 %v728_v30, %v713_v28  ;;  %v731_v33 = vadd.f32 %v729_v31, %v714_v29  ;;  %s2826_s16 = sld [smem:[#allocation56_spill]]  ;;  %s2827_s5 = sld [smem:[#allocation38_spill]] }
 0x317   : > { %s2828_s29 = sld [smem:[#allocation46_spill]]  ;;  %s2829_s21 = sld [smem:[#allocation63_spill]] }
 0x318   : > { %v732_v34 = vadd.f32 %v731_v33, %v730_v32  ;;  %s1939_s14 = smov [#allocation14]  }
 0x319   : > { %s1795_s27 = sshll.u32 %s1939_s14, 4  ;;  %s1796_s27 = int_to_ptr.vmem [resolvable:$false] %s1795_s27 }
 0x31a   : > { %733 = vadd.xlane.f32.xlu0 %v732_v34  ;;  %s1797_s6 = scalar_lea.vmem %s1796_s27, 512 }
 0x31b   : > { %s1131_s28 = sshll.u32 %s2825_s24, 1 }
 0x31c   : > { %s790_s7 = sadd.s32 %s1140_s1, %s1131_s28  ;;  %s794_s10 = sshll.u32 %s2826_s16, 4  ;;  %s2665_s10 = int_to_ptr.vmem [resolvable:$true] %s794_s10 }
 0x31d   : > { %s1132_s19 = sshll.u32 %s790_s7, 7  ;;  %s2830_s9 = sand.u32 1, %s2827_s5  }
 0x31e   : > { %s2663_s4 = scalar_lea.hbm %s2829_s21, %s1132_s19  ;;  %s778_s18 = scalar_lea.sflag [#allocation8], %s2830_s9 }
 0x31f   : > { %s1791_s2 = scalar_lea.vmem %s2665_s10, 256  ;;  %p2831_p2 = scmp.ne.s32.totalorder %s2828_s29, 0 }
 0x320   : > { %p1792_p4 = scmp.ne.s32.totalorder %s2665_s10, %s1791_s2  ;;  %p1798_p13 = scmp.lt.s32.totalorder %s2665_s10, %s1796_s27 }
 0x321   : > { %p1799_p8 = scmp.lt.s32.totalorder %s1797_s6, %s1791_s2 }
 0x322   : > { %p1793_p7 = pnand %p1792_p4, %p2831_p2 }
 0x323   : > { %p1800_p11 = por %p1799_p8, %p1798_p13 }
 0x324   : > { %p1794_p9 = pneg %p1793_p7 }
 0x326   : > { %p1801_p1 = pnand %p1800_p11, %p1794_p9 }
 0x3a7   : > { %v734_v35 = vpop.xlane.xlu0 %733 }
 0x3a8   : > { %v736_v36 = vmul.f32 0.00390625, %v734_v35 }
 0x3aa   : > { %v737_v37 = vsub.f32 %v730_v32, %v736_v36  ;;  %v738_v38 = vsub.f32 %v731_v33, %v736_v36 }
 0x3ac   : > { %v739_v39 = vmul.f32 %v737_v37, %v737_v37  ;;  %v740_v40 = vmul.f32 %v738_v38, %v738_v38 }
 0x3ae   : > { %v741_v41 = vadd.f32 %v740_v40, %v739_v39 }
 0x3b0   : > { %742 = vadd.xlane.f32.xlu0 %v741_v41 }
 0x43d   : > { %v743_v42 = vpop.xlane.xlu0 %742 }
 0x43e   : > { %v744_v43 = vmul.f32 0.00390625, %v743_v42 }
 0x440   : > { %v745_v44 = vadd.f32 1e-12, %v744_v43 }
 0x442   : > { %1281 = vrsqrt.f32 %v745_v44 }
 0x44c   : > { %v1282_v47 = vpop.eup %1281 }
 0x44d   : > { %v747_v48 = vmul.f32 %v1282_v47, %v737_v37  ;;  %v748_v49 = vmul.f32 %v1282_v47, %v738_v38 }
 0x44f   : > { %v760_v52 = vmul.f32 %v753_v45, %v747_v48  ;;  %v761_v53 = vmul.f32 %v757_v46, %v748_v49 }
 0x451   : > { %v773_v54 = vadd.f32 %v766_v50, %v760_v52  ;;  %v774_v55 = vadd.f32 %v770_v51, %v761_v53 }
 0x453   : > { %775 = vst [vmem:[%s2826_s16] sm:$0xff] %v773_v54  ;;  %776 = vst [vmem:[%s2826_s16 + $0x8] sm:$0xff] %v774_v55 }
 0x454   : > { %1804 = shalt.err (!%p1801_p1)
}
 0x455   : > { %s1805_s22 = scalar_lea.hbm %s2663_s4, 256  ;;  %s1809_s20 = scalar_lea.hbm %s2829_s21, 1536 }
 0x456   : > { %p1806_p5 = scmp.ne.s32.totalorder %s2663_s4, %s1805_s22  ;;  %p1810_p3 = scmp.lt.u32.totalorder %s2663_s4, %s2829_s21 }
 0x457   : > { %p1811_p0 = scmp.lt.u32.totalorder %s1809_s20, %s1805_s22  ;;  %p1813_p4 = scmp.lt.u32.totalorder %s1805_s22, %s2663_s4 }
 0x458   : > { %p1807_p12 = pnand %p1806_p5, %p2831_p2 }
 0x459   : > { %p1812_p6 = por %p1811_p0, %p1810_p3 }
 0x45a   : > { %p1808_p10 = pneg %p1807_p12 }
 0x45b   : > { %p1814_p7 = por %p1813_p4, %p1812_p6 }
 0x45d   : > { %p1815_p9 = pnand %p1814_p7, %p1808_p10 }
 0x45f   : > { %1818 = shalt.err (!%p1815_p9)
}
 0x460   : > { %1155 = dma.vmem_to_hbm [thread:$0]  (%p2831_p2), %s2665_s10, 256, %s2663_s4, %s778_s18  }
 0x461 PF: > { %s2832_s8 = sld [smem:[#allocation45_spill]]  ;;  %s2833_s23 = sld [smem:[#allocation37_spill]] }
 0x462   : > { %s2834_s3 = sld [smem:[#allocation47_spill]] }
 0x467   : > { %p1182_p13 = scmp.ge.s32.totalorder %s2832_s8, 2  ;;  %s806_s15 = sand.u32 1, %s2833_s23  }
 0x468   : > { %p2835_p8 = scmp.ne.s32.totalorder %s2834_s3, 0  ;;  %s807_s26 = scalar_lea.sflag [#allocation8], %s806_s15 }
 0x46a   : > { %p1172_p11 = pnand %p1182_p13, %p2835_p8 }
 0x46c   : > { %1880 = dma.done.wait (!%p1172_p11), %s807_s26, 256  }
 0x46d   : > { %1882 = vsyncadd (!%p1172_p11), %s807_s26, 4294967040  ;;  %s29_s20 = sadd.s32 1, %s2832_s8   ;;  %s2836_s11 = sld [smem:[#allocation38_spill]] }
 0x46e   : > { %p26_p1 = scmp.ge.s32.totalorder %s29_s20, 8   ;;  %s2837_s12 = sld [smem:[#allocation39_spill]] }
 0x46f   : > { %s2838_s13 = sld [smem:[#allocation51_spill]]  ;;  %s2839_s14 = sld [smem:[#allocation40_spill]] }
 0x470   : > { %s2840_s15 = sld [smem:[#allocation41_spill]]  ;;  %s2841_s0 = sld [smem:[#allocation50_spill]] }
 0x471   : > { %s2842_s16 = sld [smem:[#allocation43_spill]]  ;;  %s2843_s17 = sld [smem:[#allocation44_spill]] }
 0x472   : > { %s2844_s18 = sld [smem:[#allocation48_spill]]  ;;  %s2845_s19 = sld [smem:[#allocation49_spill]] }
 0x473   :  { %28 = sbr.rel (!%p26_p1) target bundleno = 25 (0x19), region = 145 }
 0x47a   :  { %812 = vsyncpa [#allocation7], 1 }
 0x47b   :  { %814 = vsyncpa [#allocation7 + $0x1], 1 }
 0x47c   :  { %815 = vsyncpa [#allocation10], 1 }
 0x47d   :  { %816 = vsyncpa [#allocation13], 1 }
 0x47e   :  { %817 = vsyncpa [#allocation8], 1 }
 0x47f   :  { %819 = vsyncpa [#allocation8 + $0x1], 1 }
 0x480   :  { %820 = vsyncmov [#allocation3] }
 0x483   :  { %s821_s24 = vpop.sfrf %820 }
 0x484   :  { %p1135_p2 = scmp.ne.s32.totalorder %s821_s24, 0 }
 0x486   :  { %825 = shalt.err (%p1135_p2)  }
 0x487   :  { %827 = vsyncmov [#allocation3 + $0x1] }
 0x48a   :  { %s828_s1 = vpop.sfrf %827 }
 0x48b   :  { %p1136_p5 = scmp.ne.s32.totalorder %s828_s1, 0 }
 0x48d   :  { %832 = shalt.err (%p1136_p5)  }

</bundles_post_ra>
